<compile_context>
chip_gen: v5e
topology: v5e:2x2
jax: 0.10.0
libtpu: 0.0.40
codegen_flags: <defaults>
</compile_context>

<pallas_src>
import numpy as np

import jax
import jax.numpy as jnp
from jax.experimental import pallas as pl
from jax.experimental.pallas import tpu as pltpu


# ----------------------------------------------------------------------------
# Constant selection matrix: folds the 2x2 corner de-interleave AND the Haar
# butterfly into a single lane-space matmul.
#
# The kernel sees each output row's two source rows merged on the lane axis:
#     row[0:W]  = x[2*ho, :]   (top),   row[W:2W] = x[2*ho+1, :]   (bottom)
# and  row @ T = [HL | LH | HH | LL]  (each Wo wide), with
#     a = top-even, b = top-odd, c = bottom-even, d = bottom-odd
#     HL = .5(a+b-c-d)  LH = .5(a-b+c-d)  HH = .5(a-b-c+d)  LL = .5(a+b+c+d)
# ----------------------------------------------------------------------------
def make_haar_matrix(W):
    Wo = W // 2
    T = np.zeros((2 * W, 4 * Wo), np.float32)
    wo = np.arange(Wo)
    te, to, be, bo = 2 * wo, 2 * wo + 1, W + 2 * wo, W + 2 * wo + 1
    band_signs = (
        (+1.0, +1.0, -1.0, -1.0),   # HL
        (+1.0, -1.0, +1.0, -1.0),   # LH
        (+1.0, -1.0, -1.0, +1.0),   # HH
        (+1.0, +1.0, +1.0, +1.0),   # LL
    )
    for k, (sa, sb, sc, sd) in enumerate(band_signs):
        cols = k * Wo + wo
        T[te, cols] = 0.5 * sa
        T[to, cols] = 0.5 * sb
        T[be, cols] = 0.5 * sc
        T[bo, cols] = 0.5 * sd
    return jnp.asarray(T, jnp.float32)


# ----------------------------------------------------------------------------
# Pallas kernel
#   x_ref   : (C, tile_ho, 2W)   VMEM   raw NCHW rows (row pair merged on lanes)
#   t_ref   : (2W, 4Wo)          VMEM   Haar/de-interleave selection matrix
#   w1_ref  : (3C, Cm)           SMEM   conv_bn_relu weights  [HL|LH|HH rows]
#   b1_ref  : (Cm,)              SMEM
#   wl_ref  : (C, Cout)          SMEM   outconv_bn_relu_L
#   bl_ref  : (Cout,)            SMEM
#   wh_ref  : (Cm, Cout)         SMEM   outconv_bn_relu_H
#   bh_ref  : (Cout,)            SMEM
#   out_ref : (Cout, tile_ho, Wo) VMEM  NCHW output tile
# ----------------------------------------------------------------------------
def wtfdown_kernel(x_ref, t_ref, w1_ref, b1_ref, wl_ref, bl_ref, wh_ref, bh_ref,
                   out_ref):
    C, tile_ho, _ = x_ref.shape
    Cout = out_ref.shape[0]
    Cm = b1_ref.shape[0]
    Wo = t_ref.shape[1] // 4

    T = t_ref[...]

    # --- Haar DWT + 2x2 de-interleave on the MXU (one small matmul/channel).
    hl, lh, hh, ll = [], [], [], []
    for c in range(C):
        bands = jnp.dot(x_ref[c], T, preferred_element_type=jnp.float32)
        hl.append(bands[:, 0 * Wo:1 * Wo])
        lh.append(bands[:, 1 * Wo:2 * Wo])
        hh.append(bands[:, 2 * Wo:3 * Wo])
        ll.append(bands[:, 3 * Wo:4 * Wo])

    # --- conv_bn_relu on concat([HL, LH, HH]) : (3C -> Cm), unrolled on VPU.
    m = []
    for ci in range(Cm):
        acc = jnp.full((tile_ho, Wo), b1_ref[ci], jnp.float32)
        for c in range(C):
            acc = acc + w1_ref[0 * C + c, ci] * hl[c]
            acc = acc + w1_ref[1 * C + c, ci] * lh[c]
            acc = acc + w1_ref[2 * C + c, ci] * hh[c]
        m.append(jnp.maximum(acc, 0.0))

    # --- outconv_bn_relu_L(LL) + outconv_bn_relu_H(m), fused add + store.
    for o in range(Cout):
        acc_l = jnp.full((tile_ho, Wo), bl_ref[o], jnp.float32)
        acc_h = jnp.full((tile_ho, Wo), bh_ref[o], jnp.float32)
        for c in range(C):
            acc_l = acc_l + wl_ref[c, o] * ll[c]
        for ci in range(Cm):
            acc_h = acc_h + wh_ref[ci, o] * m[ci]
        out_ref[o] = (jnp.maximum(acc_l, 0.0)
                      + jnp.maximum(acc_h, 0.0)).astype(out_ref.dtype)


# ----------------------------------------------------------------------------
# Tiling heuristic: multiple of 8 (f32 sublane tile) or the full Ho, divides
# Ho exactly (no padding), sized so each step moves ~target_bytes of input.
# ----------------------------------------------------------------------------
def _pick_tile_ho(B, Ho, C, W, target_bytes=1 << 20):
    if Ho % 8 != 0:
        return Ho                                   # full-dim exception
    bytes_per_out_row = C * 2 * W * 4
    t = max(8, (int(target_bytes // max(bytes_per_out_row, 1)) // 8) * 8)
    t = min(t, Ho)
    # single-image call: keep >=2 grid steps so both v7x TensorCores get work
    if B == 1 and t == Ho and Ho >= 16:
        t = max(8, (Ho // 2 // 8) * 8)
    while Ho % t != 0:
        t -= 8
    return t


# ----------------------------------------------------------------------------
# Wrapper
# ----------------------------------------------------------------------------
def wtfdown_forward(x, params, *, target_step_bytes=1 << 20):
    B, C, H, W = x.shape
    assert H % 2 == 0 and W % 2 == 0, "WTFDown needs even spatial dims"
    Ho, Wo = H // 2, W // 2
    Cout = params["bl"].shape[0]

    tile_ho = _pick_tile_ho(B, Ho, C, W, target_step_bytes)
    n_tiles = Ho // tile_ho

    # Free reshape (metadata only): merge each row pair onto the lane axis.
    x_r = x.reshape(B, C, Ho, 2 * W)
    T = make_haar_matrix(W)

    smem = pl.BlockSpec(memory_space=pltpu.MemorySpace.SMEM)

    out = pl.pallas_call(
        wtfdown_kernel,
        out_shape=jax.ShapeDtypeStruct((B, Cout, Ho, Wo), x.dtype),
        grid=(B, n_tiles),
        in_specs=[
            pl.BlockSpec((None, C, tile_ho, 2 * W), lambda b, i: (b, 0, i, 0)),
            pl.BlockSpec((2 * W, 4 * Wo), lambda b, i: (0, 0)),
            smem,   # w1  (3C, Cm)
            smem,   # b1  (Cm,)
            smem,   # wl  (C, Cout)
            smem,   # bl  (Cout,)
            smem,   # wh  (Cm, Cout)
            smem,   # bh  (Cout,)
        ],
        out_specs=pl.BlockSpec((None, Cout, tile_ho, Wo),
                               lambda b, i: (b, 0, i, 0)),
        compiler_params=pltpu.CompilerParams(
            dimension_semantics=("parallel", "parallel")),
    )(x_r, T,
      params["w1"], params["b1"],
      params["wl"], params["bl"],
      params["wh"], params["bh"])
    return out


# ----------------------------------------------------------------------------
# Deterministic parameters + inference-mode BN folding
# ----------------------------------------------------------------------------
def make_params(key, in_ch, out_ch):
    ks = jax.random.split(key, 9)
    p = {}
    # 1x1 conv weights stored directly as (C_in, C_out) matmul matrices
    p["w1"] = jax.random.normal(ks[0], (3 * in_ch, in_ch), jnp.float32) * 0.2
    p["b1_conv"] = jax.random.normal(ks[1], (in_ch,), jnp.float32) * 0.05
    p["wl_conv"] = jax.random.normal(ks[2], (in_ch, out_ch), jnp.float32) * 0.2
    p["bl_conv"] = jax.random.normal(ks[3], (out_ch,), jnp.float32) * 0.05
    p["wh_conv"] = jax.random.normal(ks[4], (in_ch, out_ch), jnp.float32) * 0.2
    p["bh_conv"] = jax.random.normal(ks[5], (out_ch,), jnp.float32) * 0.05

    def bn(k, c):
        k1, k2, k3, k4 = jax.random.split(k, 4)
        return dict(
            gamma=1.0 + 0.1 * jax.random.normal(k1, (c,), jnp.float32),
            beta=0.05 * jax.random.normal(k2, (c,), jnp.float32),
            mean=0.05 * jax.random.normal(k3, (c,), jnp.float32),
            var=1.0 + jnp.abs(0.1 * jax.random.normal(k4, (c,), jnp.float32)),
        )

    p["bn1"] = bn(ks[6], in_ch)
    p["bnl"] = bn(ks[7], out_ch)
    p["bnh"] = bn(ks[8], out_ch)
    return p


def fold_params(p, eps=1e-5):
    def fold(w, b, bn):
        scale = bn["gamma"] / jnp.sqrt(bn["var"] + eps)
        return w * scale[None, :], (b - bn["mean"]) * scale + bn["beta"]

    w1, b1 = fold(p["w1"], p["b1_conv"], p["bn1"])        # (3C, C), (C,)
    wl, bl = fold(p["wl_conv"], p["bl_conv"], p["bnl"])   # (C, Cout), (Cout,)
    wh, bh = fold(p["wh_conv"], p["bh_conv"], p["bnh"])   # (C, Cout), (Cout,)
    return {"w1": w1, "b1": b1, "wl": wl, "bl": bl, "wh": wh, "bh": bh}


# ----------------------------------------------------------------------------
# Pure-JAX reference (per-band math, same BN-folded weights)
# ----------------------------------------------------------------------------
def reference_forward(x, fp):
    C = x.shape[1]
    a = x[:, :, 0::2, 0::2]
    b = x[:, :, 0::2, 1::2]
    c = x[:, :, 1::2, 0::2]
    d = x[:, :, 1::2, 1::2]
    ll = 0.5 * (a + b + c + d)
    hl = 0.5 * (a + b - c - d)
    lh = 0.5 * (a - b + c - d)
    hh = 0.5 * (a - b - c + d)

    def conv1x1(t, w, bias):
        return jnp.einsum("bchw,co->bohw", t, w) + bias.reshape(1, -1, 1, 1)

    zero = jnp.zeros_like(fp["b1"])
    m = jax.nn.relu(conv1x1(hl, fp["w1"][0:C], zero)
                    + conv1x1(lh, fp["w1"][C:2 * C], zero)
                    + conv1x1(hh, fp["w1"][2 * C:3 * C], fp["b1"]))
    yl = jax.nn.relu(conv1x1(ll, fp["wl"], fp["bl"]))
    yh = jax.nn.relu(conv1x1(m, fp["wh"], fp["bh"]))
    return yl + yh


if __name__ == "__main__":
    in_ch, out_ch = 4, 8
    B, H, W = 2, 16, 16

    key = jax.random.PRNGKey(0)
    kx, kp = jax.random.split(key)
    x = jax.random.normal(kx, (B, in_ch, H, W), jnp.float32)

    raw = make_params(kp, in_ch, out_ch)
    folded = fold_params(raw)

    out = wtfdown_forward(x, folded)
    out = jax.block_until_ready(out)

    ref = reference_forward(x, folded)
    assert out.shape == (B, out_ch, H // 2, W // 2)
    assert jnp.allclose(out, ref, atol=1e-3, rtol=1e-3)

    print("KERNEL_OK")
</pallas_src>

<mosaic_0001>
module attributes {stable_mosaic.version = 11 : i64} {
  func.func @wtfdown_kernel(%arg0: i32, %arg1: i32, %arg2: memref<1x4x8x32xf32, #tpu.memory_space<vmem>>, %arg3: memref<32x32xf32, #tpu.memory_space<vmem>>, %arg4: memref<12x4xf32, #tpu.memory_space<smem>>, %arg5: memref<4xf32, #tpu.memory_space<smem>>, %arg6: memref<4x8xf32, #tpu.memory_space<smem>>, %arg7: memref<8xf32, #tpu.memory_space<smem>>, %arg8: memref<4x8xf32, #tpu.memory_space<smem>>, %arg9: memref<8xf32, #tpu.memory_space<smem>>, %arg10: memref<1x8x8x8xf32, #tpu.memory_space<vmem>>) attributes {dimension_semantics = [#tpu.dimension_semantics<parallel>, #tpu.dimension_semantics<parallel>], iteration_bounds = array<i64: 2, 1>, scalar_prefetch = 0 : i64, scratch_operands = 0 : i64, tpu.core_type = #tpu.core_type<tc>, window_params = [{transform_indices = @transform_0, window_bounds = array<i64: 1, 4, 8, 32>}, {pipeline_mode = #tpu.pipeline_mode<synchronous>, transform_indices = @transform_1, window_bounds = array<i64: 32, 32>}, {transform_indices = @transform_2, window_bounds = array<i64: 12, 4>}, {transform_indices = @transform_3, window_bounds = array<i64: 4>}, {transform_indices = @transform_4, window_bounds = array<i64: 4, 8>}, {transform_indices = @transform_5, window_bounds = array<i64: 8>}, {transform_indices = @transform_6, window_bounds = array<i64: 4, 8>}, {transform_indices = @transform_7, window_bounds = array<i64: 8>}, {transform_indices = @transform_8, window_bounds = array<i64: 1, 8, 8, 8>}]} {
    %c0 = arith.constant 0 : index
    %c0_0 = arith.constant 0 : index
    %0 = vector.load %arg3[%c0, %c0_0] : memref<32x32xf32, #tpu.memory_space<vmem>>, vector<32x32xf32>
    %c0_1 = arith.constant 0 : index
    %c0_2 = arith.constant 0 : index
    %c0_3 = arith.constant 0 : index
    %c0_4 = arith.constant 0 : index
    %1 = vector.load %arg2[%c0_1, %c0_2, %c0_3, %c0_4] : memref<1x4x8x32xf32, #tpu.memory_space<vmem>>, vector<1x1x8x32xf32>
    %2 = vector.shape_cast %1 : vector<1x1x8x32xf32> to vector<8x32xf32>
    %cst = arith.constant dense<0.000000e+00> : vector<8x32xf32>
    %3 = tpu.matmul %2, %0, %cst {dimension_numbers = #tpu.dot_dimension_numbers<[1], [0], [0], [1], [0, 0, 1, 1], [], []>} : vector<8x32xf32>, vector<32x32xf32>, vector<8x32xf32> -> vector<8x32xf32>
    %4 = vector.extract_strided_slice %3 {offsets = [0, 0], sizes = [8, 8], strides = [1, 1]} : vector<8x32xf32> to vector<8x8xf32>
    %5 = vector.extract_strided_slice %3 {offsets = [0, 8], sizes = [8, 8], strides = [1, 1]} : vector<8x32xf32> to vector<8x8xf32>
    %6 = vector.extract_strided_slice %3 {offsets = [0, 16], sizes = [8, 8], strides = [1, 1]} : vector<8x32xf32> to vector<8x8xf32>
    %7 = vector.extract_strided_slice %3 {offsets = [0, 24], sizes = [8, 8], strides = [1, 1]} : vector<8x32xf32> to vector<8x8xf32>
    %c0_5 = arith.constant 0 : index
    %c1 = arith.constant 1 : index
    %c0_6 = arith.constant 0 : index
    %c0_7 = arith.constant 0 : index
    %8 = vector.load %arg2[%c0_5, %c1, %c0_6, %c0_7] : memref<1x4x8x32xf32, #tpu.memory_space<vmem>>, vector<1x1x8x32xf32>
    %9 = vector.shape_cast %8 : vector<1x1x8x32xf32> to vector<8x32xf32>
    %cst_8 = arith.constant dense<0.000000e+00> : vector<8x32xf32>
    %10 = tpu.matmul %9, %0, %cst_8 {dimension_numbers = #tpu.dot_dimension_numbers<[1], [0], [0], [1], [0, 0, 1, 1], [], []>} : vector<8x32xf32>, vector<32x32xf32>, vector<8x32xf32> -> vector<8x32xf32>
    %11 = vector.extract_strided_slice %10 {offsets = [0, 0], sizes = [8, 8], strides = [1, 1]} : vector<8x32xf32> to vector<8x8xf32>
    %12 = vector.extract_strided_slice %10 {offsets = [0, 8], sizes = [8, 8], strides = [1, 1]} : vector<8x32xf32> to vector<8x8xf32>
    %13 = vector.extract_strided_slice %10 {offsets = [0, 16], sizes = [8, 8], strides = [1, 1]} : vector<8x32xf32> to vector<8x8xf32>
    %14 = vector.extract_strided_slice %10 {offsets = [0, 24], sizes = [8, 8], strides = [1, 1]} : vector<8x32xf32> to vector<8x8xf32>
    %c0_9 = arith.constant 0 : index
    %c2 = arith.constant 2 : index
    %c0_10 = arith.constant 0 : index
    %c0_11 = arith.constant 0 : index
    %15 = vector.load %arg2[%c0_9, %c2, %c0_10, %c0_11] : memref<1x4x8x32xf32, #tpu.memory_space<vmem>>, vector<1x1x8x32xf32>
    %16 = vector.shape_cast %15 : vector<1x1x8x32xf32> to vector<8x32xf32>
    %cst_12 = arith.constant dense<0.000000e+00> : vector<8x32xf32>
    %17 = tpu.matmul %16, %0, %cst_12 {dimension_numbers = #tpu.dot_dimension_numbers<[1], [0], [0], [1], [0, 0, 1, 1], [], []>} : vector<8x32xf32>, vector<32x32xf32>, vector<8x32xf32> -> vector<8x32xf32>
    %18 = vector.extract_strided_slice %17 {offsets = [0, 0], sizes = [8, 8], strides = [1, 1]} : vector<8x32xf32> to vector<8x8xf32>
    %19 = vector.extract_strided_slice %17 {offsets = [0, 8], sizes = [8, 8], strides = [1, 1]} : vector<8x32xf32> to vector<8x8xf32>
    %20 = vector.extract_strided_slice %17 {offsets = [0, 16], sizes = [8, 8], strides = [1, 1]} : vector<8x32xf32> to vector<8x8xf32>
    %21 = vector.extract_strided_slice %17 {offsets = [0, 24], sizes = [8, 8], strides = [1, 1]} : vector<8x32xf32> to vector<8x8xf32>
    %c0_13 = arith.constant 0 : index
    %c3 = arith.constant 3 : index
    %c0_14 = arith.constant 0 : index
    %c0_15 = arith.constant 0 : index
    %22 = vector.load %arg2[%c0_13, %c3, %c0_14, %c0_15] : memref<1x4x8x32xf32, #tpu.memory_space<vmem>>, vector<1x1x8x32xf32>
    %23 = vector.shape_cast %22 : vector<1x1x8x32xf32> to vector<8x32xf32>
    %cst_16 = arith.constant dense<0.000000e+00> : vector<8x32xf32>
    %24 = tpu.matmul %23, %0, %cst_16 {dimension_numbers = #tpu.dot_dimension_numbers<[1], [0], [0], [1], [0, 0, 1, 1], [], []>} : vector<8x32xf32>, vector<32x32xf32>, vector<8x32xf32> -> vector<8x32xf32>
    %25 = vector.extract_strided_slice %24 {offsets = [0, 0], sizes = [8, 8], strides = [1, 1]} : vector<8x32xf32> to vector<8x8xf32>
    %26 = vector.extract_strided_slice %24 {offsets = [0, 8], sizes = [8, 8], strides = [1, 1]} : vector<8x32xf32> to vector<8x8xf32>
    %27 = vector.extract_strided_slice %24 {offsets = [0, 16], sizes = [8, 8], strides = [1, 1]} : vector<8x32xf32> to vector<8x8xf32>
    %28 = vector.extract_strided_slice %24 {offsets = [0, 24], sizes = [8, 8], strides = [1, 1]} : vector<8x32xf32> to vector<8x8xf32>
    %c0_17 = arith.constant 0 : index
    %29 = memref.load %arg5[%c0_17] : memref<4xf32, #tpu.memory_space<smem>>
    %30 = vector.broadcast %29 : f32 to vector<8x8xf32>
    %c0_18 = arith.constant 0 : index
    %c0_19 = arith.constant 0 : index
    %31 = memref.load %arg4[%c0_18, %c0_19] : memref<12x4xf32, #tpu.memory_space<smem>>
    %32 = vector.broadcast %31 : f32 to vector<8x8xf32>
    %33 = arith.mulf %32, %4 : vector<8x8xf32>
    %34 = arith.addf %30, %33 : vector<8x8xf32>
    %c4 = arith.constant 4 : index
    %c0_20 = arith.constant 0 : index
    %35 = memref.load %arg4[%c4, %c0_20] : memref<12x4xf32, #tpu.memory_space<smem>>
    %36 = vector.broadcast %35 : f32 to vector<8x8xf32>
    %37 = arith.mulf %36, %5 : vector<8x8xf32>
    %38 = arith.addf %34, %37 : vector<8x8xf32>
    %c8 = arith.constant 8 : index
    %c0_21 = arith.constant 0 : index
    %39 = memref.load %arg4[%c8, %c0_21] : memref<12x4xf32, #tpu.memory_space<smem>>
    %40 = vector.broadcast %39 : f32 to vector<8x8xf32>
    %41 = arith.mulf %40, %6 : vector<8x8xf32>
    %42 = arith.addf %38, %41 : vector<8x8xf32>
    %c1_22 = arith.constant 1 : index
    %c0_23 = arith.constant 0 : index
    %43 = memref.load %arg4[%c1_22, %c0_23] : memref<12x4xf32, #tpu.memory_space<smem>>
    %44 = vector.broadcast %43 : f32 to vector<8x8xf32>
    %45 = arith.mulf %44, %11 : vector<8x8xf32>
    %46 = arith.addf %42, %45 : vector<8x8xf32>
    %c5 = arith.constant 5 : index
    %c0_24 = arith.constant 0 : index
    %47 = memref.load %arg4[%c5, %c0_24] : memref<12x4xf32, #tpu.memory_space<smem>>
    %48 = vector.broadcast %47 : f32 to vector<8x8xf32>
    %49 = arith.mulf %48, %12 : vector<8x8xf32>
    %50 = arith.addf %46, %49 : vector<8x8xf32>
    %c9 = arith.constant 9 : index
    %c0_25 = arith.constant 0 : index
    %51 = memref.load %arg4[%c9, %c0_25] : memref<12x4xf32, #tpu.memory_space<smem>>
    %52 = vector.broadcast %51 : f32 to vector<8x8xf32>
    %53 = arith.mulf %52, %13 : vector<8x8xf32>
    %54 = arith.addf %50, %53 : vector<8x8xf32>
    %c2_26 = arith.constant 2 : index
    %c0_27 = arith.constant 0 : index
    %55 = memref.load %arg4[%c2_26, %c0_27] : memref<12x4xf32, #tpu.memory_space<smem>>
    %56 = vector.broadcast %55 : f32 to vector<8x8xf32>
    %57 = arith.mulf %56, %18 : vector<8x8xf32>
    %58 = arith.addf %54, %57 : vector<8x8xf32>
    %c6 = arith.constant 6 : index
    %c0_28 = arith.constant 0 : index
    %59 = memref.load %arg4[%c6, %c0_28] : memref<12x4xf32, #tpu.memory_space<smem>>
    %60 = vector.broadcast %59 : f32 to vector<8x8xf32>
    %61 = arith.mulf %60, %19 : vector<8x8xf32>
    %62 = arith.addf %58, %61 : vector<8x8xf32>
    %c10 = arith.constant 10 : index
    %c0_29 = arith.constant 0 : index
    %63 = memref.load %arg4[%c10, %c0_29] : memref<12x4xf32, #tpu.memory_space<smem>>
    %64 = vector.broadcast %63 : f32 to vector<8x8xf32>
    %65 = arith.mulf %64, %20 : vector<8x8xf32>
    %66 = arith.addf %62, %65 : vector<8x8xf32>
    %c3_30 = arith.constant 3 : index
    %c0_31 = arith.constant 0 : index
    %67 = memref.load %arg4[%c3_30, %c0_31] : memref<12x4xf32, #tpu.memory_space<smem>>
    %68 = vector.broadcast %67 : f32 to vector<8x8xf32>
    %69 = arith.mulf %68, %25 : vector<8x8xf32>
    %70 = arith.addf %66, %69 : vector<8x8xf32>
    %c7 = arith.constant 7 : index
    %c0_32 = arith.constant 0 : index
    %71 = memref.load %arg4[%c7, %c0_32] : memref<12x4xf32, #tpu.memory_space<smem>>
    %72 = vector.broadcast %71 : f32 to vector<8x8xf32>
    %73 = arith.mulf %72, %26 : vector<8x8xf32>
    %74 = arith.addf %70, %73 : vector<8x8xf32>
    %c11 = arith.constant 11 : index
    %c0_33 = arith.constant 0 : index
    %75 = memref.load %arg4[%c11, %c0_33] : memref<12x4xf32, #tpu.memory_space<smem>>
    %76 = vector.broadcast %75 : f32 to vector<8x8xf32>
    %77 = arith.mulf %76, %27 : vector<8x8xf32>
    %78 = arith.addf %74, %77 : vector<8x8xf32>
    %cst_34 = arith.constant 0.000000e+00 : f32
    %79 = vector.broadcast %cst_34 : f32 to vector<8x8xf32>
    %80 = arith.maximumf %78, %79 : vector<8x8xf32>
    %c1_35 = arith.constant 1 : index
    %81 = memref.load %arg5[%c1_35] : memref<4xf32, #tpu.memory_space<smem>>
    %82 = vector.broadcast %81 : f32 to vector<8x8xf32>
    %c0_36 = arith.constant 0 : index
    %c1_37 = arith.constant 1 : index
    %83 = memref.load %arg4[%c0_36, %c1_37] : memref<12x4xf32, #tpu.memory_space<smem>>
    %84 = vector.broadcast %83 : f32 to vector<8x8xf32>
    %85 = arith.mulf %84, %4 : vector<8x8xf32>
    %86 = arith.addf %82, %85 : vector<8x8xf32>
    %c4_38 = arith.constant 4 : index
    %c1_39 = arith.constant 1 : index
    %87 = memref.load %arg4[%c4_38, %c1_39] : memref<12x4xf32, #tpu.memory_space<smem>>
    %88 = vector.broadcast %87 : f32 to vector<8x8xf32>
    %89 = arith.mulf %88, %5 : vector<8x8xf32>
    %90 = arith.addf %86, %89 : vector<8x8xf32>
    %c8_40 = arith.constant 8 : index
    %c1_41 = arith.constant 1 : index
    %91 = memref.load %arg4[%c8_40, %c1_41] : memref<12x4xf32, #tpu.memory_space<smem>>
    %92 = vector.broadcast %91 : f32 to vector<8x8xf32>
    %93 = arith.mulf %92, %6 : vector<8x8xf32>
    %94 = arith.addf %90, %93 : vector<8x8xf32>
    %c1_42 = arith.constant 1 : index
    %c1_43 = arith.constant 1 : index
    %95 = memref.load %arg4[%c1_42, %c1_43] : memref<12x4xf32, #tpu.memory_space<smem>>
    %96 = vector.broadcast %95 : f32 to vector<8x8xf32>
    %97 = arith.mulf %96, %11 : vector<8x8xf32>
    %98 = arith.addf %94, %97 : vector<8x8xf32>
    %c5_44 = arith.constant 5 : index
    %c1_45 = arith.constant 1 : index
    %99 = memref.load %arg4[%c5_44, %c1_45] : memref<12x4xf32, #tpu.memory_space<smem>>
    %100 = vector.broadcast %99 : f32 to vector<8x8xf32>
    %101 = arith.mulf %100, %12 : vector<8x8xf32>
    %102 = arith.addf %98, %101 : vector<8x8xf32>
    %c9_46 = arith.constant 9 : index
    %c1_47 = arith.constant 1 : index
    %103 = memref.load %arg4[%c9_46, %c1_47] : memref<12x4xf32, #tpu.memory_space<smem>>
    %104 = vector.broadcast %103 : f32 to vector<8x8xf32>
    %105 = arith.mulf %104, %13 : vector<8x8xf32>
    %106 = arith.addf %102, %105 : vector<8x8xf32>
    %c2_48 = arith.constant 2 : index
    %c1_49 = arith.constant 1 : index
    %107 = memref.load %arg4[%c2_48, %c1_49] : memref<12x4xf32, #tpu.memory_space<smem>>
    %108 = vector.broadcast %107 : f32 to vector<8x8xf32>
    %109 = arith.mulf %108, %18 : vector<8x8xf32>
    %110 = arith.addf %106, %109 : vector<8x8xf32>
    %c6_50 = arith.constant 6 : index
    %c1_51 = arith.constant 1 : index
    %111 = memref.load %arg4[%c6_50, %c1_51] : memref<12x4xf32, #tpu.memory_space<smem>>
    %112 = vector.broadcast %111 : f32 to vector<8x8xf32>
    %113 = arith.mulf %112, %19 : vector<8x8xf32>
    %114 = arith.addf %110, %113 : vector<8x8xf32>
    %c10_52 = arith.constant 10 : index
    %c1_53 = arith.constant 1 : index
    %115 = memref.load %arg4[%c10_52, %c1_53] : memref<12x4xf32, #tpu.memory_space<smem>>
    %116 = vector.broadcast %115 : f32 to vector<8x8xf32>
    %117 = arith.mulf %116, %20 : vector<8x8xf32>
    %118 = arith.addf %114, %117 : vector<8x8xf32>
    %c3_54 = arith.constant 3 : index
    %c1_55 = arith.constant 1 : index
    %119 = memref.load %arg4[%c3_54, %c1_55] : memref<12x4xf32, #tpu.memory_space<smem>>
    %120 = vector.broadcast %119 : f32 to vector<8x8xf32>
    %121 = arith.mulf %120, %25 : vector<8x8xf32>
    %122 = arith.addf %118, %121 : vector<8x8xf32>
    %c7_56 = arith.constant 7 : index
    %c1_57 = arith.constant 1 : index
    %123 = memref.load %arg4[%c7_56, %c1_57] : memref<12x4xf32, #tpu.memory_space<smem>>
    %124 = vector.broadcast %123 : f32 to vector<8x8xf32>
    %125 = arith.mulf %124, %26 : vector<8x8xf32>
    %126 = arith.addf %122, %125 : vector<8x8xf32>
    %c11_58 = arith.constant 11 : index
    %c1_59 = arith.constant 1 : index
    %127 = memref.load %arg4[%c11_58, %c1_59] : memref<12x4xf32, #tpu.memory_space<smem>>
    %128 = vector.broadcast %127 : f32 to vector<8x8xf32>
    %129 = arith.mulf %128, %27 : vector<8x8xf32>
    %130 = arith.addf %126, %129 : vector<8x8xf32>
    %cst_60 = arith.constant 0.000000e+00 : f32
    %131 = vector.broadcast %cst_60 : f32 to vector<8x8xf32>
    %132 = arith.maximumf %130, %131 : vector<8x8xf32>
    %c2_61 = arith.constant 2 : index
    %133 = memref.load %arg5[%c2_61] : memref<4xf32, #tpu.memory_space<smem>>
    %134 = vector.broadcast %133 : f32 to vector<8x8xf32>
    %c0_62 = arith.constant 0 : index
    %c2_63 = arith.constant 2 : index
    %135 = memref.load %arg4[%c0_62, %c2_63] : memref<12x4xf32, #tpu.memory_space<smem>>
    %136 = vector.broadcast %135 : f32 to vector<8x8xf32>
    %137 = arith.mulf %136, %4 : vector<8x8xf32>
    %138 = arith.addf %134, %137 : vector<8x8xf32>
    %c4_64 = arith.constant 4 : index
    %c2_65 = arith.constant 2 : index
    %139 = memref.load %arg4[%c4_64, %c2_65] : memref<12x4xf32, #tpu.memory_space<smem>>
    %140 = vector.broadcast %139 : f32 to vector<8x8xf32>
    %141 = arith.mulf %140, %5 : vector<8x8xf32>
    %142 = arith.addf %138, %141 : vector<8x8xf32>
    %c8_66 = arith.constant 8 : index
    %c2_67 = arith.constant 2 : index
    %143 = memref.load %arg4[%c8_66, %c2_67] : memref<12x4xf32, #tpu.memory_space<smem>>
    %144 = vector.broadcast %143 : f32 to vector<8x8xf32>
    %145 = arith.mulf %144, %6 : vector<8x8xf32>
    %146 = arith.addf %142, %145 : vector<8x8xf32>
    %c1_68 = arith.constant 1 : index
    %c2_69 = arith.constant 2 : index
    %147 = memref.load %arg4[%c1_68, %c2_69] : memref<12x4xf32, #tpu.memory_space<smem>>
    %148 = vector.broadcast %147 : f32 to vector<8x8xf32>
    %149 = arith.mulf %148, %11 : vector<8x8xf32>
    %150 = arith.addf %146, %149 : vector<8x8xf32>
    %c5_70 = arith.constant 5 : index
    %c2_71 = arith.constant 2 : index
    %151 = memref.load %arg4[%c5_70, %c2_71] : memref<12x4xf32, #tpu.memory_space<smem>>
    %152 = vector.broadcast %151 : f32 to vector<8x8xf32>
    %153 = arith.mulf %152, %12 : vector<8x8xf32>
    %154 = arith.addf %150, %153 : vector<8x8xf32>
    %c9_72 = arith.constant 9 : index
    %c2_73 = arith.constant 2 : index
    %155 = memref.load %arg4[%c9_72, %c2_73] : memref<12x4xf32, #tpu.memory_space<smem>>
    %156 = vector.broadcast %155 : f32 to vector<8x8xf32>
    %157 = arith.mulf %156, %13 : vector<8x8xf32>
    %158 = arith.addf %154, %157 : vector<8x8xf32>
    %c2_74 = arith.constant 2 : index
    %c2_75 = arith.constant 2 : index
    %159 = memref.load %arg4[%c2_74, %c2_75] : memref<12x4xf32, #tpu.memory_space<smem>>
    %160 = vector.broadcast %159 : f32 to vector<8x8xf32>
    %161 = arith.mulf %160, %18 : vector<8x8xf32>
    %162 = arith.addf %158, %161 : vector<8x8xf32>
    %c6_76 = arith.constant 6 : index
    %c2_77 = arith.constant 2 : index
    %163 = memref.load %arg4[%c6_76, %c2_77] : memref<12x4xf32, #tpu.memory_space<smem>>
    %164 = vector.broadcast %163 : f32 to vector<8x8xf32>
    %165 = arith.mulf %164, %19 : vector<8x8xf32>
    %166 = arith.addf %162, %165 : vector<8x8xf32>
    %c10_78 = arith.constant 10 : index
    %c2_79 = arith.constant 2 : index
    %167 = memref.load %arg4[%c10_78, %c2_79] : memref<12x4xf32, #tpu.memory_space<smem>>
    %168 = vector.broadcast %167 : f32 to vector<8x8xf32>
    %169 = arith.mulf %168, %20 : vector<8x8xf32>
    %170 = arith.addf %166, %169 : vector<8x8xf32>
    %c3_80 = arith.constant 3 : index
    %c2_81 = arith.constant 2 : index
    %171 = memref.load %arg4[%c3_80, %c2_81] : memref<12x4xf32, #tpu.memory_space<smem>>
    %172 = vector.broadcast %171 : f32 to vector<8x8xf32>
    %173 = arith.mulf %172, %25 : vector<8x8xf32>
    %174 = arith.addf %170, %173 : vector<8x8xf32>
    %c7_82 = arith.constant 7 : index
    %c2_83 = arith.constant 2 : index
    %175 = memref.load %arg4[%c7_82, %c2_83] : memref<12x4xf32, #tpu.memory_space<smem>>
    %176 = vector.broadcast %175 : f32 to vector<8x8xf32>
    %177 = arith.mulf %176, %26 : vector<8x8xf32>
    %178 = arith.addf %174, %177 : vector<8x8xf32>
    %c11_84 = arith.constant 11 : index
    %c2_85 = arith.constant 2 : index
    %179 = memref.load %arg4[%c11_84, %c2_85] : memref<12x4xf32, #tpu.memory_space<smem>>
    %180 = vector.broadcast %179 : f32 to vector<8x8xf32>
    %181 = arith.mulf %180, %27 : vector<8x8xf32>
    %182 = arith.addf %178, %181 : vector<8x8xf32>
    %cst_86 = arith.constant 0.000000e+00 : f32
    %183 = vector.broadcast %cst_86 : f32 to vector<8x8xf32>
    %184 = arith.maximumf %182, %183 : vector<8x8xf32>
    %c3_87 = arith.constant 3 : index
    %185 = memref.load %arg5[%c3_87] : memref<4xf32, #tpu.memory_space<smem>>
    %186 = vector.broadcast %185 : f32 to vector<8x8xf32>
    %c0_88 = arith.constant 0 : index
    %c3_89 = arith.constant 3 : index
    %187 = memref.load %arg4[%c0_88, %c3_89] : memref<12x4xf32, #tpu.memory_space<smem>>
    %188 = vector.broadcast %187 : f32 to vector<8x8xf32>
    %189 = arith.mulf %188, %4 : vector<8x8xf32>
    %190 = arith.addf %186, %189 : vector<8x8xf32>
    %c4_90 = arith.constant 4 : index
    %c3_91 = arith.constant 3 : index
    %191 = memref.load %arg4[%c4_90, %c3_91] : memref<12x4xf32, #tpu.memory_space<smem>>
    %192 = vector.broadcast %191 : f32 to vector<8x8xf32>
    %193 = arith.mulf %192, %5 : vector<8x8xf32>
    %194 = arith.addf %190, %193 : vector<8x8xf32>
    %c8_92 = arith.constant 8 : index
    %c3_93 = arith.constant 3 : index
    %195 = memref.load %arg4[%c8_92, %c3_93] : memref<12x4xf32, #tpu.memory_space<smem>>
    %196 = vector.broadcast %195 : f32 to vector<8x8xf32>
    %197 = arith.mulf %196, %6 : vector<8x8xf32>
    %198 = arith.addf %194, %197 : vector<8x8xf32>
    %c1_94 = arith.constant 1 : index
    %c3_95 = arith.constant 3 : index
    %199 = memref.load %arg4[%c1_94, %c3_95] : memref<12x4xf32, #tpu.memory_space<smem>>
    %200 = vector.broadcast %199 : f32 to vector<8x8xf32>
    %201 = arith.mulf %200, %11 : vector<8x8xf32>
    %202 = arith.addf %198, %201 : vector<8x8xf32>
    %c5_96 = arith.constant 5 : index
    %c3_97 = arith.constant 3 : index
    %203 = memref.load %arg4[%c5_96, %c3_97] : memref<12x4xf32, #tpu.memory_space<smem>>
    %204 = vector.broadcast %203 : f32 to vector<8x8xf32>
    %205 = arith.mulf %204, %12 : vector<8x8xf32>
    %206 = arith.addf %202, %205 : vector<8x8xf32>
    %c9_98 = arith.constant 9 : index
    %c3_99 = arith.constant 3 : index
    %207 = memref.load %arg4[%c9_98, %c3_99] : memref<12x4xf32, #tpu.memory_space<smem>>
    %208 = vector.broadcast %207 : f32 to vector<8x8xf32>
    %209 = arith.mulf %208, %13 : vector<8x8xf32>
    %210 = arith.addf %206, %209 : vector<8x8xf32>
    %c2_100 = arith.constant 2 : index
    %c3_101 = arith.constant 3 : index
    %211 = memref.load %arg4[%c2_100, %c3_101] : memref<12x4xf32, #tpu.memory_space<smem>>
    %212 = vector.broadcast %211 : f32 to vector<8x8xf32>
    %213 = arith.mulf %212, %18 : vector<8x8xf32>
    %214 = arith.addf %210, %213 : vector<8x8xf32>
    %c6_102 = arith.constant 6 : index
    %c3_103 = arith.constant 3 : index
    %215 = memref.load %arg4[%c6_102, %c3_103] : memref<12x4xf32, #tpu.memory_space<smem>>
    %216 = vector.broadcast %215 : f32 to vector<8x8xf32>
    %217 = arith.mulf %216, %19 : vector<8x8xf32>
    %218 = arith.addf %214, %217 : vector<8x8xf32>
    %c10_104 = arith.constant 10 : index
    %c3_105 = arith.constant 3 : index
    %219 = memref.load %arg4[%c10_104, %c3_105] : memref<12x4xf32, #tpu.memory_space<smem>>
    %220 = vector.broadcast %219 : f32 to vector<8x8xf32>
    %221 = arith.mulf %220, %20 : vector<8x8xf32>
    %222 = arith.addf %218, %221 : vector<8x8xf32>
    %c3_106 = arith.constant 3 : index
    %c3_107 = arith.constant 3 : index
    %223 = memref.load %arg4[%c3_106, %c3_107] : memref<12x4xf32, #tpu.memory_space<smem>>
    %224 = vector.broadcast %223 : f32 to vector<8x8xf32>
    %225 = arith.mulf %224, %25 : vector<8x8xf32>
    %226 = arith.addf %222, %225 : vector<8x8xf32>
    %c7_108 = arith.constant 7 : index
    %c3_109 = arith.constant 3 : index
    %227 = memref.load %arg4[%c7_108, %c3_109] : memref<12x4xf32, #tpu.memory_space<smem>>
    %228 = vector.broadcast %227 : f32 to vector<8x8xf32>
    %229 = arith.mulf %228, %26 : vector<8x8xf32>
    %230 = arith.addf %226, %229 : vector<8x8xf32>
    %c11_110 = arith.constant 11 : index
    %c3_111 = arith.constant 3 : index
    %231 = memref.load %arg4[%c11_110, %c3_111] : memref<12x4xf32, #tpu.memory_space<smem>>
    %232 = vector.broadcast %231 : f32 to vector<8x8xf32>
    %233 = arith.mulf %232, %27 : vector<8x8xf32>
    %234 = arith.addf %230, %233 : vector<8x8xf32>
    %cst_112 = arith.constant 0.000000e+00 : f32
    %235 = vector.broadcast %cst_112 : f32 to vector<8x8xf32>
    %236 = arith.maximumf %234, %235 : vector<8x8xf32>
    %c0_113 = arith.constant 0 : index
    %237 = memref.load %arg7[%c0_113] : memref<8xf32, #tpu.memory_space<smem>>
    %238 = vector.broadcast %237 : f32 to vector<8x8xf32>
    %c0_114 = arith.constant 0 : index
    %239 = memref.load %arg9[%c0_114] : memref<8xf32, #tpu.memory_space<smem>>
    %240 = vector.broadcast %239 : f32 to vector<8x8xf32>
    %c0_115 = arith.constant 0 : index
    %c0_116 = arith.constant 0 : index
    %241 = memref.load %arg6[%c0_115, %c0_116] : memref<4x8xf32, #tpu.memory_space<smem>>
    %242 = vector.broadcast %241 : f32 to vector<8x8xf32>
    %243 = arith.mulf %242, %7 : vector<8x8xf32>
    %244 = arith.addf %238, %243 : vector<8x8xf32>
    %c1_117 = arith.constant 1 : index
    %c0_118 = arith.constant 0 : index
    %245 = memref.load %arg6[%c1_117, %c0_118] : memref<4x8xf32, #tpu.memory_space<smem>>
    %246 = vector.broadcast %245 : f32 to vector<8x8xf32>
    %247 = arith.mulf %246, %14 : vector<8x8xf32>
    %248 = arith.addf %244, %247 : vector<8x8xf32>
    %c2_119 = arith.constant 2 : index
    %c0_120 = arith.constant 0 : index
    %249 = memref.load %arg6[%c2_119, %c0_120] : memref<4x8xf32, #tpu.memory_space<smem>>
    %250 = vector.broadcast %249 : f32 to vector<8x8xf32>
    %251 = arith.mulf %250, %21 : vector<8x8xf32>
    %252 = arith.addf %248, %251 : vector<8x8xf32>
    %c3_121 = arith.constant 3 : index
    %c0_122 = arith.constant 0 : index
    %253 = memref.load %arg6[%c3_121, %c0_122] : memref<4x8xf32, #tpu.memory_space<smem>>
    %254 = vector.broadcast %253 : f32 to vector<8x8xf32>
    %255 = arith.mulf %254, %28 : vector<8x8xf32>
    %256 = arith.addf %252, %255 : vector<8x8xf32>
    %c0_123 = arith.constant 0 : index
    %c0_124 = arith.constant 0 : index
    %257 = memref.load %arg8[%c0_123, %c0_124] : memref<4x8xf32, #tpu.memory_space<smem>>
    %258 = vector.broadcast %257 : f32 to vector<8x8xf32>
    %259 = arith.mulf %258, %80 : vector<8x8xf32>
    %260 = arith.addf %240, %259 : vector<8x8xf32>
    %c1_125 = arith.constant 1 : index
    %c0_126 = arith.constant 0 : index
    %261 = memref.load %arg8[%c1_125, %c0_126] : memref<4x8xf32, #tpu.memory_space<smem>>
    %262 = vector.broadcast %261 : f32 to vector<8x8xf32>
    %263 = arith.mulf %262, %132 : vector<8x8xf32>
    %264 = arith.addf %260, %263 : vector<8x8xf32>
    %c2_127 = arith.constant 2 : index
    %c0_128 = arith.constant 0 : index
    %265 = memref.load %arg8[%c2_127, %c0_128] : memref<4x8xf32, #tpu.memory_space<smem>>
    %266 = vector.broadcast %265 : f32 to vector<8x8xf32>
    %267 = arith.mulf %266, %184 : vector<8x8xf32>
    %268 = arith.addf %264, %267 : vector<8x8xf32>
    %c3_129 = arith.constant 3 : index
    %c0_130 = arith.constant 0 : index
    %269 = memref.load %arg8[%c3_129, %c0_130] : memref<4x8xf32, #tpu.memory_space<smem>>
    %270 = vector.broadcast %269 : f32 to vector<8x8xf32>
    %271 = arith.mulf %270, %236 : vector<8x8xf32>
    %272 = arith.addf %268, %271 : vector<8x8xf32>
    %cst_131 = arith.constant 0.000000e+00 : f32
    %273 = vector.broadcast %cst_131 : f32 to vector<8x8xf32>
    %274 = arith.maximumf %256, %273 : vector<8x8xf32>
    %cst_132 = arith.constant 0.000000e+00 : f32
    %275 = vector.broadcast %cst_132 : f32 to vector<8x8xf32>
    %276 = arith.maximumf %272, %275 : vector<8x8xf32>
    %277 = arith.addf %274, %276 : vector<8x8xf32>
    %c0_133 = arith.constant 0 : index
    %c0_134 = arith.constant 0 : index
    %c0_135 = arith.constant 0 : index
    %c0_136 = arith.constant 0 : index
    %278 = vector.load %arg10[%c0_133, %c0_134, %c0_135, %c0_136] : memref<1x8x8x8xf32, #tpu.memory_space<vmem>>, vector<1x1x8x8xf32>
    %279 = vector.shape_cast %278 : vector<1x1x8x8xf32> to vector<8x8xf32>
    %280 = vector.shape_cast %277 : vector<8x8xf32> to vector<1x1x8x8xf32>
    tpu.vector_store %arg10[%c0_133, %c0_134, %c0_135, %c0_136], %280 {strides = array<i32>} : memref<1x8x8x8xf32, #tpu.memory_space<vmem>>, vector<1x1x8x8xf32>,
    %c1_137 = arith.constant 1 : index
    %281 = memref.load %arg7[%c1_137] : memref<8xf32, #tpu.memory_space<smem>>
    %282 = vector.broadcast %281 : f32 to vector<8x8xf32>
    %c1_138 = arith.constant 1 : index
    %283 = memref.load %arg9[%c1_138] : memref<8xf32, #tpu.memory_space<smem>>
    %284 = vector.broadcast %283 : f32 to vector<8x8xf32>
    %c0_139 = arith.constant 0 : index
    %c1_140 = arith.constant 1 : index
    %285 = memref.load %arg6[%c0_139, %c1_140] : memref<4x8xf32, #tpu.memory_space<smem>>
    %286 = vector.broadcast %285 : f32 to vector<8x8xf32>
    %287 = arith.mulf %286, %7 : vector<8x8xf32>
    %288 = arith.addf %282, %287 : vector<8x8xf32>
    %c1_141 = arith.constant 1 : index
    %c1_142 = arith.constant 1 : index
    %289 = memref.load %arg6[%c1_141, %c1_142] : memref<4x8xf32, #tpu.memory_space<smem>>
    %290 = vector.broadcast %289 : f32 to vector<8x8xf32>
    %291 = arith.mulf %290, %14 : vector<8x8xf32>
    %292 = arith.addf %288, %291 : vector<8x8xf32>
    %c2_143 = arith.constant 2 : index
    %c1_144 = arith.constant 1 : index
    %293 = memref.load %arg6[%c2_143, %c1_144] : memref<4x8xf32, #tpu.memory_space<smem>>
    %294 = vector.broadcast %293 : f32 to vector<8x8xf32>
    %295 = arith.mulf %294, %21 : vector<8x8xf32>
    %296 = arith.addf %292, %295 : vector<8x8xf32>
    %c3_145 = arith.constant 3 : index
    %c1_146 = arith.constant 1 : index
    %297 = memref.load %arg6[%c3_145, %c1_146] : memref<4x8xf32, #tpu.memory_space<smem>>
    %298 = vector.broadcast %297 : f32 to vector<8x8xf32>
    %299 = arith.mulf %298, %28 : vector<8x8xf32>
    %300 = arith.addf %296, %299 : vector<8x8xf32>
    %c0_147 = arith.constant 0 : index
    %c1_148 = arith.constant 1 : index
    %301 = memref.load %arg8[%c0_147, %c1_148] : memref<4x8xf32, #tpu.memory_space<smem>>
    %302 = vector.broadcast %301 : f32 to vector<8x8xf32>
    %303 = arith.mulf %302, %80 : vector<8x8xf32>
    %304 = arith.addf %284, %303 : vector<8x8xf32>
    %c1_149 = arith.constant 1 : index
    %c1_150 = arith.constant 1 : index
    %305 = memref.load %arg8[%c1_149, %c1_150] : memref<4x8xf32, #tpu.memory_space<smem>>
    %306 = vector.broadcast %305 : f32 to vector<8x8xf32>
    %307 = arith.mulf %306, %132 : vector<8x8xf32>
    %308 = arith.addf %304, %307 : vector<8x8xf32>
    %c2_151 = arith.constant 2 : index
    %c1_152 = arith.constant 1 : index
    %309 = memref.load %arg8[%c2_151, %c1_152] : memref<4x8xf32, #tpu.memory_space<smem>>
    %310 = vector.broadcast %309 : f32 to vector<8x8xf32>
    %311 = arith.mulf %310, %184 : vector<8x8xf32>
    %312 = arith.addf %308, %311 : vector<8x8xf32>
    %c3_153 = arith.constant 3 : index
    %c1_154 = arith.constant 1 : index
    %313 = memref.load %arg8[%c3_153, %c1_154] : memref<4x8xf32, #tpu.memory_space<smem>>
    %314 = vector.broadcast %313 : f32 to vector<8x8xf32>
    %315 = arith.mulf %314, %236 : vector<8x8xf32>
    %316 = arith.addf %312, %315 : vector<8x8xf32>
    %cst_155 = arith.constant 0.000000e+00 : f32
    %317 = vector.broadcast %cst_155 : f32 to vector<8x8xf32>
    %318 = arith.maximumf %300, %317 : vector<8x8xf32>
    %cst_156 = arith.constant 0.000000e+00 : f32
    %319 = vector.broadcast %cst_156 : f32 to vector<8x8xf32>
    %320 = arith.maximumf %316, %319 : vector<8x8xf32>
    %321 = arith.addf %318, %320 : vector<8x8xf32>
    %c0_157 = arith.constant 0 : index
    %c1_158 = arith.constant 1 : index
    %c0_159 = arith.constant 0 : index
    %c0_160 = arith.constant 0 : index
    %322 = vector.load %arg10[%c0_157, %c1_158, %c0_159, %c0_160] : memref<1x8x8x8xf32, #tpu.memory_space<vmem>>, vector<1x1x8x8xf32>
    %323 = vector.shape_cast %322 : vector<1x1x8x8xf32> to vector<8x8xf32>
    %324 = vector.shape_cast %321 : vector<8x8xf32> to vector<1x1x8x8xf32>
    tpu.vector_store %arg10[%c0_157, %c1_158, %c0_159, %c0_160], %324 {strides = array<i32>} : memref<1x8x8x8xf32, #tpu.memory_space<vmem>>, vector<1x1x8x8xf32>,
    %c2_161 = arith.constant 2 : index
    %325 = memref.load %arg7[%c2_161] : memref<8xf32, #tpu.memory_space<smem>>
    %326 = vector.broadcast %325 : f32 to vector<8x8xf32>
    %c2_162 = arith.constant 2 : index
    %327 = memref.load %arg9[%c2_162] : memref<8xf32, #tpu.memory_space<smem>>
    %328 = vector.broadcast %327 : f32 to vector<8x8xf32>
    %c0_163 = arith.constant 0 : index
    %c2_164 = arith.constant 2 : index
    %329 = memref.load %arg6[%c0_163, %c2_164] : memref<4x8xf32, #tpu.memory_space<smem>>
    %330 = vector.broadcast %329 : f32 to vector<8x8xf32>
    %331 = arith.mulf %330, %7 : vector<8x8xf32>
    %332 = arith.addf %326, %331 : vector<8x8xf32>
    %c1_165 = arith.constant 1 : index
    %c2_166 = arith.constant 2 : index
    %333 = memref.load %arg6[%c1_165, %c2_166] : memref<4x8xf32, #tpu.memory_space<smem>>
    %334 = vector.broadcast %333 : f32 to vector<8x8xf32>
    %335 = arith.mulf %334, %14 : vector<8x8xf32>
    %336 = arith.addf %332, %335 : vector<8x8xf32>
    %c2_167 = arith.constant 2 : index
    %c2_168 = arith.constant 2 : index
    %337 = memref.load %arg6[%c2_167, %c2_168] : memref<4x8xf32, #tpu.memory_space<smem>>
    %338 = vector.broadcast %337 : f32 to vector<8x8xf32>
    %339 = arith.mulf %338, %21 : vector<8x8xf32>
    %340 = arith.addf %336, %339 : vector<8x8xf32>
    %c3_169 = arith.constant 3 : index
    %c2_170 = arith.constant 2 : index
    %341 = memref.load %arg6[%c3_169, %c2_170] : memref<4x8xf32, #tpu.memory_space<smem>>
    %342 = vector.broadcast %341 : f32 to vector<8x8xf32>
    %343 = arith.mulf %342, %28 : vector<8x8xf32>
    %344 = arith.addf %340, %343 : vector<8x8xf32>
    %c0_171 = arith.constant 0 : index
    %c2_172 = arith.constant 2 : index
    %345 = memref.load %arg8[%c0_171, %c2_172] : memref<4x8xf32, #tpu.memory_space<smem>>
    %346 = vector.broadcast %345 : f32 to vector<8x8xf32>
    %347 = arith.mulf %346, %80 : vector<8x8xf32>
    %348 = arith.addf %328, %347 : vector<8x8xf32>
    %c1_173 = arith.constant 1 : index
    %c2_174 = arith.constant 2 : index
    %349 = memref.load %arg8[%c1_173, %c2_174] : memref<4x8xf32, #tpu.memory_space<smem>>
    %350 = vector.broadcast %349 : f32 to vector<8x8xf32>
    %351 = arith.mulf %350, %132 : vector<8x8xf32>
    %352 = arith.addf %348, %351 : vector<8x8xf32>
    %c2_175 = arith.constant 2 : index
    %c2_176 = arith.constant 2 : index
    %353 = memref.load %arg8[%c2_175, %c2_176] : memref<4x8xf32, #tpu.memory_space<smem>>
    %354 = vector.broadcast %353 : f32 to vector<8x8xf32>
    %355 = arith.mulf %354, %184 : vector<8x8xf32>
    %356 = arith.addf %352, %355 : vector<8x8xf32>
    %c3_177 = arith.constant 3 : index
    %c2_178 = arith.constant 2 : index
    %357 = memref.load %arg8[%c3_177, %c2_178] : memref<4x8xf32, #tpu.memory_space<smem>>
    %358 = vector.broadcast %357 : f32 to vector<8x8xf32>
    %359 = arith.mulf %358, %236 : vector<8x8xf32>
    %360 = arith.addf %356, %359 : vector<8x8xf32>
    %cst_179 = arith.constant 0.000000e+00 : f32
    %361 = vector.broadcast %cst_179 : f32 to vector<8x8xf32>
    %362 = arith.maximumf %344, %361 : vector<8x8xf32>
    %cst_180 = arith.constant 0.000000e+00 : f32
    %363 = vector.broadcast %cst_180 : f32 to vector<8x8xf32>
    %364 = arith.maximumf %360, %363 : vector<8x8xf32>
    %365 = arith.addf %362, %364 : vector<8x8xf32>
    %c0_181 = arith.constant 0 : index
    %c2_182 = arith.constant 2 : index
    %c0_183 = arith.constant 0 : index
    %c0_184 = arith.constant 0 : index
    %366 = vector.load %arg10[%c0_181, %c2_182, %c0_183, %c0_184] : memref<1x8x8x8xf32, #tpu.memory_space<vmem>>, vector<1x1x8x8xf32>
    %367 = vector.shape_cast %366 : vector<1x1x8x8xf32> to vector<8x8xf32>
    %368 = vector.shape_cast %365 : vector<8x8xf32> to vector<1x1x8x8xf32>
    tpu.vector_store %arg10[%c0_181, %c2_182, %c0_183, %c0_184], %368 {strides = array<i32>} : memref<1x8x8x8xf32, #tpu.memory_space<vmem>>, vector<1x1x8x8xf32>,
    %c3_185 = arith.constant 3 : index
    %369 = memref.load %arg7[%c3_185] : memref<8xf32, #tpu.memory_space<smem>>
    %370 = vector.broadcast %369 : f32 to vector<8x8xf32>
    %c3_186 = arith.constant 3 : index
    %371 = memref.load %arg9[%c3_186] : memref<8xf32, #tpu.memory_space<smem>>
    %372 = vector.broadcast %371 : f32 to vector<8x8xf32>
    %c0_187 = arith.constant 0 : index
    %c3_188 = arith.constant 3 : index
    %373 = memref.load %arg6[%c0_187, %c3_188] : memref<4x8xf32, #tpu.memory_space<smem>>
    %374 = vector.broadcast %373 : f32 to vector<8x8xf32>
    %375 = arith.mulf %374, %7 : vector<8x8xf32>
    %376 = arith.addf %370, %375 : vector<8x8xf32>
    %c1_189 = arith.constant 1 : index
    %c3_190 = arith.constant 3 : index
    %377 = memref.load %arg6[%c1_189, %c3_190] : memref<4x8xf32, #tpu.memory_space<smem>>
    %378 = vector.broadcast %377 : f32 to vector<8x8xf32>
    %379 = arith.mulf %378, %14 : vector<8x8xf32>
    %380 = arith.addf %376, %379 : vector<8x8xf32>
    %c2_191 = arith.constant 2 : index
    %c3_192 = arith.constant 3 : index
    %381 = memref.load %arg6[%c2_191, %c3_192] : memref<4x8xf32, #tpu.memory_space<smem>>
    %382 = vector.broadcast %381 : f32 to vector<8x8xf32>
    %383 = arith.mulf %382, %21 : vector<8x8xf32>
    %384 = arith.addf %380, %383 : vector<8x8xf32>
    %c3_193 = arith.constant 3 : index
    %c3_194 = arith.constant 3 : index
    %385 = memref.load %arg6[%c3_193, %c3_194] : memref<4x8xf32, #tpu.memory_space<smem>>
    %386 = vector.broadcast %385 : f32 to vector<8x8xf32>
    %387 = arith.mulf %386, %28 : vector<8x8xf32>
    %388 = arith.addf %384, %387 : vector<8x8xf32>
    %c0_195 = arith.constant 0 : index
    %c3_196 = arith.constant 3 : index
    %389 = memref.load %arg8[%c0_195, %c3_196] : memref<4x8xf32, #tpu.memory_space<smem>>
    %390 = vector.broadcast %389 : f32 to vector<8x8xf32>
    %391 = arith.mulf %390, %80 : vector<8x8xf32>
    %392 = arith.addf %372, %391 : vector<8x8xf32>
    %c1_197 = arith.constant 1 : index
    %c3_198 = arith.constant 3 : index
    %393 = memref.load %arg8[%c1_197, %c3_198] : memref<4x8xf32, #tpu.memory_space<smem>>
    %394 = vector.broadcast %393 : f32 to vector<8x8xf32>
    %395 = arith.mulf %394, %132 : vector<8x8xf32>
    %396 = arith.addf %392, %395 : vector<8x8xf32>
    %c2_199 = arith.constant 2 : index
    %c3_200 = arith.constant 3 : index
    %397 = memref.load %arg8[%c2_199, %c3_200] : memref<4x8xf32, #tpu.memory_space<smem>>
    %398 = vector.broadcast %397 : f32 to vector<8x8xf32>
    %399 = arith.mulf %398, %184 : vector<8x8xf32>
    %400 = arith.addf %396, %399 : vector<8x8xf32>
    %c3_201 = arith.constant 3 : index
    %c3_202 = arith.constant 3 : index
    %401 = memref.load %arg8[%c3_201, %c3_202] : memref<4x8xf32, #tpu.memory_space<smem>>
    %402 = vector.broadcast %401 : f32 to vector<8x8xf32>
    %403 = arith.mulf %402, %236 : vector<8x8xf32>
    %404 = arith.addf %400, %403 : vector<8x8xf32>
    %cst_203 = arith.constant 0.000000e+00 : f32
    %405 = vector.broadcast %cst_203 : f32 to vector<8x8xf32>
    %406 = arith.maximumf %388, %405 : vector<8x8xf32>
    %cst_204 = arith.constant 0.000000e+00 : f32
    %407 = vector.broadcast %cst_204 : f32 to vector<8x8xf32>
    %408 = arith.maximumf %404, %407 : vector<8x8xf32>
    %409 = arith.addf %406, %408 : vector<8x8xf32>
    %c0_205 = arith.constant 0 : index
    %c3_206 = arith.constant 3 : index
    %c0_207 = arith.constant 0 : index
    %c0_208 = arith.constant 0 : index
    %410 = vector.load %arg10[%c0_205, %c3_206, %c0_207, %c0_208] : memref<1x8x8x8xf32, #tpu.memory_space<vmem>>, vector<1x1x8x8xf32>
    %411 = vector.shape_cast %410 : vector<1x1x8x8xf32> to vector<8x8xf32>
    %412 = vector.shape_cast %409 : vector<8x8xf32> to vector<1x1x8x8xf32>
    tpu.vector_store %arg10[%c0_205, %c3_206, %c0_207, %c0_208], %412 {strides = array<i32>} : memref<1x8x8x8xf32, #tpu.memory_space<vmem>>, vector<1x1x8x8xf32>,
    %c4_209 = arith.constant 4 : index
    %413 = memref.load %arg7[%c4_209] : memref<8xf32, #tpu.memory_space<smem>>
    %414 = vector.broadcast %413 : f32 to vector<8x8xf32>
    %c4_210 = arith.constant 4 : index
    %415 = memref.load %arg9[%c4_210] : memref<8xf32, #tpu.memory_space<smem>>
    %416 = vector.broadcast %415 : f32 to vector<8x8xf32>
    %c0_211 = arith.constant 0 : index
    %c4_212 = arith.constant 4 : index
    %417 = memref.load %arg6[%c0_211, %c4_212] : memref<4x8xf32, #tpu.memory_space<smem>>
    %418 = vector.broadcast %417 : f32 to vector<8x8xf32>
    %419 = arith.mulf %418, %7 : vector<8x8xf32>
    %420 = arith.addf %414, %419 : vector<8x8xf32>
    %c1_213 = arith.constant 1 : index
    %c4_214 = arith.constant 4 : index
    %421 = memref.load %arg6[%c1_213, %c4_214] : memref<4x8xf32, #tpu.memory_space<smem>>
    %422 = vector.broadcast %421 : f32 to vector<8x8xf32>
    %423 = arith.mulf %422, %14 : vector<8x8xf32>
    %424 = arith.addf %420, %423 : vector<8x8xf32>
    %c2_215 = arith.constant 2 : index
    %c4_216 = arith.constant 4 : index
    %425 = memref.load %arg6[%c2_215, %c4_216] : memref<4x8xf32, #tpu.memory_space<smem>>
    %426 = vector.broadcast %425 : f32 to vector<8x8xf32>
    %427 = arith.mulf %426, %21 : vector<8x8xf32>
    %428 = arith.addf %424, %427 : vector<8x8xf32>
    %c3_217 = arith.constant 3 : index
    %c4_218 = arith.constant 4 : index
    %429 = memref.load %arg6[%c3_217, %c4_218] : memref<4x8xf32, #tpu.memory_space<smem>>
    %430 = vector.broadcast %429 : f32 to vector<8x8xf32>
    %431 = arith.mulf %430, %28 : vector<8x8xf32>
    %432 = arith.addf %428, %431 : vector<8x8xf32>
    %c0_219 = arith.constant 0 : index
    %c4_220 = arith.constant 4 : index
    %433 = memref.load %arg8[%c0_219, %c4_220] : memref<4x8xf32, #tpu.memory_space<smem>>
    %434 = vector.broadcast %433 : f32 to vector<8x8xf32>
    %435 = arith.mulf %434, %80 : vector<8x8xf32>
    %436 = arith.addf %416, %435 : vector<8x8xf32>
    %c1_221 = arith.constant 1 : index
    %c4_222 = arith.constant 4 : index
    %437 = memref.load %arg8[%c1_221, %c4_222] : memref<4x8xf32, #tpu.memory_space<smem>>
    %438 = vector.broadcast %437 : f32 to vector<8x8xf32>
    %439 = arith.mulf %438, %132 : vector<8x8xf32>
    %440 = arith.addf %436, %439 : vector<8x8xf32>
    %c2_223 = arith.constant 2 : index
    %c4_224 = arith.constant 4 : index
    %441 = memref.load %arg8[%c2_223, %c4_224] : memref<4x8xf32, #tpu.memory_space<smem>>
    %442 = vector.broadcast %441 : f32 to vector<8x8xf32>
    %443 = arith.mulf %442, %184 : vector<8x8xf32>
    %444 = arith.addf %440, %443 : vector<8x8xf32>
    %c3_225 = arith.constant 3 : index
    %c4_226 = arith.constant 4 : index
    %445 = memref.load %arg8[%c3_225, %c4_226] : memref<4x8xf32, #tpu.memory_space<smem>>
    %446 = vector.broadcast %445 : f32 to vector<8x8xf32>
    %447 = arith.mulf %446, %236 : vector<8x8xf32>
    %448 = arith.addf %444, %447 : vector<8x8xf32>
    %cst_227 = arith.constant 0.000000e+00 : f32
    %449 = vector.broadcast %cst_227 : f32 to vector<8x8xf32>
    %450 = arith.maximumf %432, %449 : vector<8x8xf32>
    %cst_228 = arith.constant 0.000000e+00 : f32
    %451 = vector.broadcast %cst_228 : f32 to vector<8x8xf32>
    %452 = arith.maximumf %448, %451 : vector<8x8xf32>
    %453 = arith.addf %450, %452 : vector<8x8xf32>
    %c0_229 = arith.constant 0 : index
    %c4_230 = arith.constant 4 : index
    %c0_231 = arith.constant 0 : index
    %c0_232 = arith.constant 0 : index
    %454 = vector.load %arg10[%c0_229, %c4_230, %c0_231, %c0_232] : memref<1x8x8x8xf32, #tpu.memory_space<vmem>>, vector<1x1x8x8xf32>
    %455 = vector.shape_cast %454 : vector<1x1x8x8xf32> to vector<8x8xf32>
    %456 = vector.shape_cast %453 : vector<8x8xf32> to vector<1x1x8x8xf32>
    tpu.vector_store %arg10[%c0_229, %c4_230, %c0_231, %c0_232], %456 {strides = array<i32>} : memref<1x8x8x8xf32, #tpu.memory_space<vmem>>, vector<1x1x8x8xf32>,
    %c5_233 = arith.constant 5 : index
    %457 = memref.load %arg7[%c5_233] : memref<8xf32, #tpu.memory_space<smem>>
    %458 = vector.broadcast %457 : f32 to vector<8x8xf32>
    %c5_234 = arith.constant 5 : index
    %459 = memref.load %arg9[%c5_234] : memref<8xf32, #tpu.memory_space<smem>>
    %460 = vector.broadcast %459 : f32 to vector<8x8xf32>
    %c0_235 = arith.constant 0 : index
    %c5_236 = arith.constant 5 : index
    %461 = memref.load %arg6[%c0_235, %c5_236] : memref<4x8xf32, #tpu.memory_space<smem>>
    %462 = vector.broadcast %461 : f32 to vector<8x8xf32>
    %463 = arith.mulf %462, %7 : vector<8x8xf32>
    %464 = arith.addf %458, %463 : vector<8x8xf32>
    %c1_237 = arith.constant 1 : index
    %c5_238 = arith.constant 5 : index
    %465 = memref.load %arg6[%c1_237, %c5_238] : memref<4x8xf32, #tpu.memory_space<smem>>
    %466 = vector.broadcast %465 : f32 to vector<8x8xf32>
    %467 = arith.mulf %466, %14 : vector<8x8xf32>
    %468 = arith.addf %464, %467 : vector<8x8xf32>
    %c2_239 = arith.constant 2 : index
    %c5_240 = arith.constant 5 : index
    %469 = memref.load %arg6[%c2_239, %c5_240] : memref<4x8xf32, #tpu.memory_space<smem>>
    %470 = vector.broadcast %469 : f32 to vector<8x8xf32>
    %471 = arith.mulf %470, %21 : vector<8x8xf32>
    %472 = arith.addf %468, %471 : vector<8x8xf32>
    %c3_241 = arith.constant 3 : index
    %c5_242 = arith.constant 5 : index
    %473 = memref.load %arg6[%c3_241, %c5_242] : memref<4x8xf32, #tpu.memory_space<smem>>
    %474 = vector.broadcast %473 : f32 to vector<8x8xf32>
    %475 = arith.mulf %474, %28 : vector<8x8xf32>
    %476 = arith.addf %472, %475 : vector<8x8xf32>
    %c0_243 = arith.constant 0 : index
    %c5_244 = arith.constant 5 : index
    %477 = memref.load %arg8[%c0_243, %c5_244] : memref<4x8xf32, #tpu.memory_space<smem>>
    %478 = vector.broadcast %477 : f32 to vector<8x8xf32>
    %479 = arith.mulf %478, %80 : vector<8x8xf32>
    %480 = arith.addf %460, %479 : vector<8x8xf32>
    %c1_245 = arith.constant 1 : index
    %c5_246 = arith.constant 5 : index
    %481 = memref.load %arg8[%c1_245, %c5_246] : memref<4x8xf32, #tpu.memory_space<smem>>
    %482 = vector.broadcast %481 : f32 to vector<8x8xf32>
    %483 = arith.mulf %482, %132 : vector<8x8xf32>
    %484 = arith.addf %480, %483 : vector<8x8xf32>
    %c2_247 = arith.constant 2 : index
    %c5_248 = arith.constant 5 : index
    %485 = memref.load %arg8[%c2_247, %c5_248] : memref<4x8xf32, #tpu.memory_space<smem>>
    %486 = vector.broadcast %485 : f32 to vector<8x8xf32>
    %487 = arith.mulf %486, %184 : vector<8x8xf32>
    %488 = arith.addf %484, %487 : vector<8x8xf32>
    %c3_249 = arith.constant 3 : index
    %c5_250 = arith.constant 5 : index
    %489 = memref.load %arg8[%c3_249, %c5_250] : memref<4x8xf32, #tpu.memory_space<smem>>
    %490 = vector.broadcast %489 : f32 to vector<8x8xf32>
    %491 = arith.mulf %490, %236 : vector<8x8xf32>
    %492 = arith.addf %488, %491 : vector<8x8xf32>
    %cst_251 = arith.constant 0.000000e+00 : f32
    %493 = vector.broadcast %cst_251 : f32 to vector<8x8xf32>
    %494 = arith.maximumf %476, %493 : vector<8x8xf32>
    %cst_252 = arith.constant 0.000000e+00 : f32
    %495 = vector.broadcast %cst_252 : f32 to vector<8x8xf32>
    %496 = arith.maximumf %492, %495 : vector<8x8xf32>
    %497 = arith.addf %494, %496 : vector<8x8xf32>
    %c0_253 = arith.constant 0 : index
    %c5_254 = arith.constant 5 : index
    %c0_255 = arith.constant 0 : index
    %c0_256 = arith.constant 0 : index
    %498 = vector.load %arg10[%c0_253, %c5_254, %c0_255, %c0_256] : memref<1x8x8x8xf32, #tpu.memory_space<vmem>>, vector<1x1x8x8xf32>
    %499 = vector.shape_cast %498 : vector<1x1x8x8xf32> to vector<8x8xf32>
    %500 = vector.shape_cast %497 : vector<8x8xf32> to vector<1x1x8x8xf32>
    tpu.vector_store %arg10[%c0_253, %c5_254, %c0_255, %c0_256], %500 {strides = array<i32>} : memref<1x8x8x8xf32, #tpu.memory_space<vmem>>, vector<1x1x8x8xf32>,
    %c6_257 = arith.constant 6 : index
    %501 = memref.load %arg7[%c6_257] : memref<8xf32, #tpu.memory_space<smem>>
    %502 = vector.broadcast %501 : f32 to vector<8x8xf32>
    %c6_258 = arith.constant 6 : index
    %503 = memref.load %arg9[%c6_258] : memref<8xf32, #tpu.memory_space<smem>>
    %504 = vector.broadcast %503 : f32 to vector<8x8xf32>
    %c0_259 = arith.constant 0 : index
    %c6_260 = arith.constant 6 : index
    %505 = memref.load %arg6[%c0_259, %c6_260] : memref<4x8xf32, #tpu.memory_space<smem>>
    %506 = vector.broadcast %505 : f32 to vector<8x8xf32>
    %507 = arith.mulf %506, %7 : vector<8x8xf32>
    %508 = arith.addf %502, %507 : vector<8x8xf32>
    %c1_261 = arith.constant 1 : index
    %c6_262 = arith.constant 6 : index
    %509 = memref.load %arg6[%c1_261, %c6_262] : memref<4x8xf32, #tpu.memory_space<smem>>
    %510 = vector.broadcast %509 : f32 to vector<8x8xf32>
    %511 = arith.mulf %510, %14 : vector<8x8xf32>
    %512 = arith.addf %508, %511 : vector<8x8xf32>
    %c2_263 = arith.constant 2 : index
    %c6_264 = arith.constant 6 : index
    %513 = memref.load %arg6[%c2_263, %c6_264] : memref<4x8xf32, #tpu.memory_space<smem>>
    %514 = vector.broadcast %513 : f32 to vector<8x8xf32>
    %515 = arith.mulf %514, %21 : vector<8x8xf32>
    %516 = arith.addf %512, %515 : vector<8x8xf32>
    %c3_265 = arith.constant 3 : index
    %c6_266 = arith.constant 6 : index
    %517 = memref.load %arg6[%c3_265, %c6_266] : memref<4x8xf32, #tpu.memory_space<smem>>
    %518 = vector.broadcast %517 : f32 to vector<8x8xf32>
    %519 = arith.mulf %518, %28 : vector<8x8xf32>
    %520 = arith.addf %516, %519 : vector<8x8xf32>
    %c0_267 = arith.constant 0 : index
    %c6_268 = arith.constant 6 : index
    %521 = memref.load %arg8[%c0_267, %c6_268] : memref<4x8xf32, #tpu.memory_space<smem>>
    %522 = vector.broadcast %521 : f32 to vector<8x8xf32>
    %523 = arith.mulf %522, %80 : vector<8x8xf32>
    %524 = arith.addf %504, %523 : vector<8x8xf32>
    %c1_269 = arith.constant 1 : index
    %c6_270 = arith.constant 6 : index
    %525 = memref.load %arg8[%c1_269, %c6_270] : memref<4x8xf32, #tpu.memory_space<smem>>
    %526 = vector.broadcast %525 : f32 to vector<8x8xf32>
    %527 = arith.mulf %526, %132 : vector<8x8xf32>
    %528 = arith.addf %524, %527 : vector<8x8xf32>
    %c2_271 = arith.constant 2 : index
    %c6_272 = arith.constant 6 : index
    %529 = memref.load %arg8[%c2_271, %c6_272] : memref<4x8xf32, #tpu.memory_space<smem>>
    %530 = vector.broadcast %529 : f32 to vector<8x8xf32>
    %531 = arith.mulf %530, %184 : vector<8x8xf32>
    %532 = arith.addf %528, %531 : vector<8x8xf32>
    %c3_273 = arith.constant 3 : index
    %c6_274 = arith.constant 6 : index
    %533 = memref.load %arg8[%c3_273, %c6_274] : memref<4x8xf32, #tpu.memory_space<smem>>
    %534 = vector.broadcast %533 : f32 to vector<8x8xf32>
    %535 = arith.mulf %534, %236 : vector<8x8xf32>
    %536 = arith.addf %532, %535 : vector<8x8xf32>
    %cst_275 = arith.constant 0.000000e+00 : f32
    %537 = vector.broadcast %cst_275 : f32 to vector<8x8xf32>
    %538 = arith.maximumf %520, %537 : vector<8x8xf32>
    %cst_276 = arith.constant 0.000000e+00 : f32
    %539 = vector.broadcast %cst_276 : f32 to vector<8x8xf32>
    %540 = arith.maximumf %536, %539 : vector<8x8xf32>
    %541 = arith.addf %538, %540 : vector<8x8xf32>
    %c0_277 = arith.constant 0 : index
    %c6_278 = arith.constant 6 : index
    %c0_279 = arith.constant 0 : index
    %c0_280 = arith.constant 0 : index
    %542 = vector.load %arg10[%c0_277, %c6_278, %c0_279, %c0_280] : memref<1x8x8x8xf32, #tpu.memory_space<vmem>>, vector<1x1x8x8xf32>
    %543 = vector.shape_cast %542 : vector<1x1x8x8xf32> to vector<8x8xf32>
    %544 = vector.shape_cast %541 : vector<8x8xf32> to vector<1x1x8x8xf32>
    tpu.vector_store %arg10[%c0_277, %c6_278, %c0_279, %c0_280], %544 {strides = array<i32>} : memref<1x8x8x8xf32, #tpu.memory_space<vmem>>, vector<1x1x8x8xf32>,
    %c7_281 = arith.constant 7 : index
    %545 = memref.load %arg7[%c7_281] : memref<8xf32, #tpu.memory_space<smem>>
    %546 = vector.broadcast %545 : f32 to vector<8x8xf32>
    %c7_282 = arith.constant 7 : index
    %547 = memref.load %arg9[%c7_282] : memref<8xf32, #tpu.memory_space<smem>>
    %548 = vector.broadcast %547 : f32 to vector<8x8xf32>
    %c0_283 = arith.constant 0 : index
    %c7_284 = arith.constant 7 : index
    %549 = memref.load %arg6[%c0_283, %c7_284] : memref<4x8xf32, #tpu.memory_space<smem>>
    %550 = vector.broadcast %549 : f32 to vector<8x8xf32>
    %551 = arith.mulf %550, %7 : vector<8x8xf32>
    %552 = arith.addf %546, %551 : vector<8x8xf32>
    %c1_285 = arith.constant 1 : index
    %c7_286 = arith.constant 7 : index
    %553 = memref.load %arg6[%c1_285, %c7_286] : memref<4x8xf32, #tpu.memory_space<smem>>
    %554 = vector.broadcast %553 : f32 to vector<8x8xf32>
    %555 = arith.mulf %554, %14 : vector<8x8xf32>
    %556 = arith.addf %552, %555 : vector<8x8xf32>
    %c2_287 = arith.constant 2 : index
    %c7_288 = arith.constant 7 : index
    %557 = memref.load %arg6[%c2_287, %c7_288] : memref<4x8xf32, #tpu.memory_space<smem>>
    %558 = vector.broadcast %557 : f32 to vector<8x8xf32>
    %559 = arith.mulf %558, %21 : vector<8x8xf32>
    %560 = arith.addf %556, %559 : vector<8x8xf32>
    %c3_289 = arith.constant 3 : index
    %c7_290 = arith.constant 7 : index
    %561 = memref.load %arg6[%c3_289, %c7_290] : memref<4x8xf32, #tpu.memory_space<smem>>
    %562 = vector.broadcast %561 : f32 to vector<8x8xf32>
    %563 = arith.mulf %562, %28 : vector<8x8xf32>
    %564 = arith.addf %560, %563 : vector<8x8xf32>
    %c0_291 = arith.constant 0 : index
    %c7_292 = arith.constant 7 : index
    %565 = memref.load %arg8[%c0_291, %c7_292] : memref<4x8xf32, #tpu.memory_space<smem>>
    %566 = vector.broadcast %565 : f32 to vector<8x8xf32>
    %567 = arith.mulf %566, %80 : vector<8x8xf32>
    %568 = arith.addf %548, %567 : vector<8x8xf32>
    %c1_293 = arith.constant 1 : index
    %c7_294 = arith.constant 7 : index
    %569 = memref.load %arg8[%c1_293, %c7_294] : memref<4x8xf32, #tpu.memory_space<smem>>
    %570 = vector.broadcast %569 : f32 to vector<8x8xf32>
    %571 = arith.mulf %570, %132 : vector<8x8xf32>
    %572 = arith.addf %568, %571 : vector<8x8xf32>
    %c2_295 = arith.constant 2 : index
    %c7_296 = arith.constant 7 : index
    %573 = memref.load %arg8[%c2_295, %c7_296] : memref<4x8xf32, #tpu.memory_space<smem>>
    %574 = vector.broadcast %573 : f32 to vector<8x8xf32>
    %575 = arith.mulf %574, %184 : vector<8x8xf32>
    %576 = arith.addf %572, %575 : vector<8x8xf32>
    %c3_297 = arith.constant 3 : index
    %c7_298 = arith.constant 7 : index
    %577 = memref.load %arg8[%c3_297, %c7_298] : memref<4x8xf32, #tpu.memory_space<smem>>
    %578 = vector.broadcast %577 : f32 to vector<8x8xf32>
    %579 = arith.mulf %578, %236 : vector<8x8xf32>
    %580 = arith.addf %576, %579 : vector<8x8xf32>
    %cst_299 = arith.constant 0.000000e+00 : f32
    %581 = vector.broadcast %cst_299 : f32 to vector<8x8xf32>
    %582 = arith.maximumf %564, %581 : vector<8x8xf32>
    %cst_300 = arith.constant 0.000000e+00 : f32
    %583 = vector.broadcast %cst_300 : f32 to vector<8x8xf32>
    %584 = arith.maximumf %580, %583 : vector<8x8xf32>
    %585 = arith.addf %582, %584 : vector<8x8xf32>
    %c0_301 = arith.constant 0 : index
    %c7_302 = arith.constant 7 : index
    %c0_303 = arith.constant 0 : index
    %c0_304 = arith.constant 0 : index
    %586 = vector.load %arg10[%c0_301, %c7_302, %c0_303, %c0_304] : memref<1x8x8x8xf32, #tpu.memory_space<vmem>>, vector<1x1x8x8xf32>
    %587 = vector.shape_cast %586 : vector<1x1x8x8xf32> to vector<8x8xf32>
    %588 = vector.shape_cast %585 : vector<8x8xf32> to vector<1x1x8x8xf32>
    tpu.vector_store %arg10[%c0_301, %c7_302, %c0_303, %c0_304], %588 {strides = array<i32>} : memref<1x8x8x8xf32, #tpu.memory_space<vmem>>, vector<1x1x8x8xf32>,
    return
  }
  func.func @transform_0(%arg0: i32, %arg1: i32) -> (i32, i32, i32, i32) {
    %c0_i32 = arith.constant 0 : i32
    %c0_i32_0 = arith.constant 0 : i32
    %c0_i32_1 = arith.constant 0 : i32
    return %arg0, %c0_i32, %arg1, %c0_i32_0 : i32, i32, i32, i32
  }
  func.func @transform_1(%arg0: i32, %arg1: i32) -> (i32, i32) {
    %c0_i32 = arith.constant 0 : i32
    %c0_i32_0 = arith.constant 0 : i32
    %c0_i32_1 = arith.constant 0 : i32
    return %c0_i32, %c0_i32_0 : i32, i32
  }
  func.func @transform_2(%arg0: i32, %arg1: i32) -> (i32, i32) {
    %c0_i32 = arith.constant 0 : i32
    %c0_i32_0 = arith.constant 0 : i32
    %c0_i32_1 = arith.constant 0 : i32
    return %c0_i32, %c0_i32_0 : i32, i32
  }
  func.func @transform_3(%arg0: i32, %arg1: i32) -> i32 {
    %c0_i32 = arith.constant 0 : i32
    %c0_i32_0 = arith.constant 0 : i32
    return %c0_i32 : i32
  }
  func.func @transform_4(%arg0: i32, %arg1: i32) -> (i32, i32) {
    %c0_i32 = arith.constant 0 : i32
    %c0_i32_0 = arith.constant 0 : i32
    %c0_i32_1 = arith.constant 0 : i32
    return %c0_i32, %c0_i32_0 : i32, i32
  }
  func.func @transform_5(%arg0: i32, %arg1: i32) -> i32 {
    %c0_i32 = arith.constant 0 : i32
    %c0_i32_0 = arith.constant 0 : i32
    return %c0_i32 : i32
  }
  func.func @transform_6(%arg0: i32, %arg1: i32) -> (i32, i32) {
    %c0_i32 = arith.constant 0 : i32
    %c0_i32_0 = arith.constant 0 : i32
    %c0_i32_1 = arith.constant 0 : i32
    return %c0_i32, %c0_i32_0 : i32, i32
  }
  func.func @transform_7(%arg0: i32, %arg1: i32) -> i32 {
    %c0_i32 = arith.constant 0 : i32
    %c0_i32_0 = arith.constant 0 : i32
    return %c0_i32 : i32
  }
  func.func @transform_8(%arg0: i32, %arg1: i32) -> (i32, i32, i32, i32) {
    %c0_i32 = arith.constant 0 : i32
    %c0_i32_0 = arith.constant 0 : i32
    %c0_i32_1 = arith.constant 0 : i32
    return %arg0, %c0_i32, %arg1, %c0_i32_0 : i32, i32, i32, i32
  }
}

</mosaic_0001>

<bundles_post_ra>
// kernel: tpu_custom_call.1
= control target key start
LH: loop header
LB: loop body
LE: loop exit
PB: predicated region body
PF: predicated region fallthrough
CT: control target
= control target key end

     0   :  { %s2756_s0 = inlined_call_operand.hbm [shape: f32[2,4,8,32], index: 0, kind: input, shape index: {}]   ;;  %s2757_s1 = inlined_call_operand.hbm [shape: f32[32,32], index: 1, kind: input, shape index: {}]   ;;  %s2758_s2 = inlined_call_operand.vmem [shape: f32[12,4], index: 2, kind: input, shape index: {}]   ;;  %s2759_s3 = inlined_call_operand.vmem [shape: f32[4], index: 3, kind: input, shape index: {}]   ;;  %s2760_s4 = inlined_call_operand.vmem [shape: f32[4,8], index: 4, kind: input, shape index: {}]   ;;  %s2761_s5 = inlined_call_operand.vmem [shape: f32[8], index: 5, kind: input, shape index: {}]   ;;  %s2762_s6 = inlined_call_operand.vmem [shape: f32[4,8], index: 6, kind: input, shape index: {}]   ;;  %s2763_s7 = inlined_call_operand.vmem [shape: f32[8], index: 7, kind: input, shape index: {}]   ;;  %s2764_s8 = inlined_call_operand.hbm [shape: f32[2,8,8,8], index: 8, kind: output, shape index: {}]  }
   0x1   :  { %2780 = sst [smem:[#allocation39_spill]] %s2756_s0 }
   0x2   :  { %2781 = sst [smem:[#allocation40_spill]] %s2757_s1 }
   0x3   :  { %2782 = sst [smem:[#allocation41_spill]] %s2758_s2 }
   0x4   :  { %2783 = sst [smem:[#allocation42_spill]] %s2759_s3 }
   0x5   :  { %2784 = sst [smem:[#allocation43_spill]] %s2760_s4 }
   0x6   :  { %2785 = sst [smem:[#allocation44_spill]] %s2761_s5 }
   0x7   :  { %2786 = sst [smem:[#allocation45_spill]] %s2762_s6 }
   0x8   :  { %2787 = sst [smem:[#allocation46_spill]] %s2763_s7 }
   0x9   :  { %2788 = sst [smem:[#allocation47_spill]] %s2764_s8 }
   0xa   :  { %13 = vsyncpa [#allocation3], 0 }
   0xb   :  { %15 = vsyncpa [#allocation3 + $0x1], 0 }
   0xc   :  { %16 = vsyncpa [#allocation7], 0 }
   0xd   :  { %17 = vsyncpa [#allocation5], 0 }
   0xe   :  { %18 = vsyncpa [#allocation10], 0 }
   0xf   :  { %19 = vsyncpa [#allocation13], 0 }
  0x10   :  { %20 = vsyncpa [#allocation16], 0 }
  0x11   :  { %21 = vsyncpa [#allocation4], 0 }
  0x12   :  { %23 = vsyncpa [#allocation4 + $0x1], 0  ;;  %s2065_s27 = smov 0   ;;  %s2067_s28 = smov 0  }
  0x13   :  { %s2069_s29 = smov 0   ;;  %s2071_s30 = smov 0  }
  0x14   :  { %s2073_s9 = smov 0   ;;  %s2075_s10 = smov 0  }
  0x15 LB: > { %2789 = sst [smem:[#allocation25_spill]] %s1983_s27  ;;  %s1439_s14 = sadd.s32 4294967295, %s2003_s10   ;;  %s2003_s10 = sphi %s2075_s10, %s29_s10   ;;  %s1999_s9 = sphi %s2073_s9, %s2836_s9   ;;  %s1995_s30 = sphi %s2071_s30, %s2835_s30   ;;  %s1991_s29 = sphi %s2069_s29, %s2834_s29   ;;  %s1987_s28 = sphi %s2067_s28, %s2833_s28   ;;  %s1983_s27 = sphi %s2065_s27, %s2832_s27  }
  0x16   : > { %2790 = sst [smem:[#allocation26_spill]] %s1987_s28  ;;  %p1441_p0 = scmp.ge.s32.totalorder %s2003_s10, 1 }
  0x17   : > { %2791 = sst [smem:[#allocation27_spill]] %s1991_s29  ;;  %p2102_p1 = scmp.eq.s32.totalorder %s1439_s14, 0 }
  0x18   : > { %2792 = sst [smem:[#allocation28_spill]] %s1995_s30  ;;  %p249_p2 = scmp.lt.s32.totalorder %s2003_s10, 3 }
  0x19   : > { %2793 = sst [smem:[#allocation29_spill]] %s1999_s9  ;;  %p1449_p4 = scmp.ge.s32.totalorder %s2003_s10, 2 }
  0x1a   : > { %2794 = sst [smem:[#allocation30_spill]] %s2003_s10  ;;  %p2107_p3 = pnand %p1441_p0, %p249_p2 }
  0x1b   : > { %s2795_s3 = sld [smem:[#allocation42_spill]]  ;;  %s2005_s24 = smov [#allocation6]  }
  0x1c   : > { %s2798_s5 = sld [smem:[#allocation44_spill]]  ;;  %p1642_p5 = pneg %p2107_p3 }
  0x1d   : > { %s2799_s1 = sld [smem:[#allocation40_spill]]  ;;  %s262_s25 = sshll.u32 %s2005_s24, 4  ;;  %s263_s25 = int_to_ptr.vmem [resolvable:$true] %s262_s25 }
  0x1e   : > { %p2122_p6 = pnand %p1642_p5, %p2102_p1  ;;  %s2006_s26 = smov [#allocation9]  }
  0x1f   : > { %s2007_s11 = smov [#allocation12]   ;;  %s2801_s2 = sld [smem:[#allocation41_spill]] }
  0x20   : > { %s2765_s20 = smov 128   ;;  %s2766_s21 = smov 8  }
  0x21   : > { %s287_s13 = sshll.u32 %s2795_s3, 4  ;;  %s2802_s4 = sld [smem:[#allocation43_spill]]  ;;  %s288_s13 = int_to_ptr.vmem [resolvable:$true] %s287_s13 }
  0x22   : > { %s307_s19 = sshll.u32 %s2798_s5, 4  ;;  %s2803_s6 = sld [smem:[#allocation45_spill]]  ;;  %s308_s19 = int_to_ptr.vmem [resolvable:$true] %s307_s19 }
  0x23   : > { %s260_s22 = sshll.u32 %s2799_s1, 4  ;;  %s2012_s17 = smov [#allocation14]   ;;  %s261_s22 = int_to_ptr.hbm [resolvable:$true] %s260_s22 }
  0x24   : > { %1651 = dma.vmem_to_smem (!%p2122_p6), %s288_s13, 16, %s2006_s26, [#allocation10]  }
  0x25   : > { %1657 = dma.vmem_to_smem (!%p2122_p6), %s308_s19, 16, %s2007_s11, [#allocation13]  }
  0x26   : > { %s274_s18 = sshll.u32 %s2801_s2, 4  ;;  %s2010_s13 = smov [#allocation8]   ;;  %s275_s18 = int_to_ptr.vmem [resolvable:$true] %s274_s18 }
  0x27   : > { %1645 = dma.hbm_to_vmem [thread:$0]  (!%p2122_p6), %s261_s22, 512, %s263_s25, [#allocation7], %s2765_s20, %s2765_s20, %s2766_s21  }
  0x28   : > { %1648 = dma.vmem_to_smem (!%p2122_p6), %s275_s18, 256, %s2010_s13, [#allocation5], %s2765_s20, %s2765_s20, %s2766_s21  }
  0x29   : > { %s297_s26 = sshll.u32 %s2802_s4, 4  ;;  %s317_s22 = sshll.u32 %s2803_s6, 4  ;;  %s298_s26 = int_to_ptr.vmem [resolvable:$true] %s297_s26  ;;  %s318_s22 = int_to_ptr.vmem [resolvable:$true] %s317_s22 }
  0x2a   : > { %s2011_s25 = smov [#allocation11]   ;;  %s2804_s7 = sld [smem:[#allocation46_spill]] }
  0x2b   : > { %1654 = dma.vmem_to_smem (!%p2122_p6), %s298_s26, 64, %s2011_s25, [#allocation10]  }
  0x2c   : > { %1660 = dma.vmem_to_smem (!%p2122_p6), %s318_s22, 64, %s2012_s17, [#allocation13]  }
  0x2d   : > { %s2013_s24 = smov [#allocation15]   ;;  %s1440_s11 = sadd.s32 4294967294, %s2003_s10  }
  0x2e   : > { %s41_s12 = sadd.s32 1, %s1999_s9  ;;  %s50_s26 = sadd.s32 1, %s1991_s29 }
  0x2f   : > { %p43_p7 = scmp.ge.s32.totalorder %s41_s12, 2  ;;  %p57_p8 = scmp.ne.s32.totalorder %s1991_s29, %s1987_s28 }
  0x30   : > { %s327_s19 = sshll.u32 %s2804_s7, 4  ;;  %p58_p9 = scmp.eq.s32.totalorder %s2003_s10, 0  ;;  %s328_s19 = int_to_ptr.vmem [resolvable:$true] %s327_s19 }
  0x31   : > { %1663 = dma.vmem_to_smem (!%p2122_p6), %s328_s19, 16, %s2013_s24, [#allocation16]  }
  0x32   : > { %p63_p10 = scmp.ne.s32.totalorder %s1987_s28, %s1983_s27  ;;  %s2838_s12 = smov (%p43_p7, %s41_s12), 0 }
  0x33   : > { %2805 = sst [smem:[#allocation31_spill]] %s2838_s12  ;;  %p2168_p11 = por %p58_p9, %p57_p8 }
  0x34   : > { %p2174_p12 = por %p2102_p1, %p63_p10  ;;  %s45_s25 = ssub.s32 %s1999_s9, %s2838_s12 }
  0x35   : > { %p236_p13 = scmp.eq.s32.totalorder %s1439_s14, 1  ;;  %p48_p0 = scmp.eq.s32.totalorder %s45_s25, 0 }
  0x36   : > { %p242_p2 = scmp.eq.s32.totalorder %s1440_s11, 1  ;;  %p1679_p6 = scmp.lt.s32.totalorder %s2003_s10, 2 }
  0x37   : > { %p2182_p5 = por %p236_p13, %p57_p8  ;;  %s338_s19 = sand.u32 1, %s1991_s29  }
  0x38   : > { %s2188_s18 = scalar_select %p48_p0, %s1991_s29, %s50_s26  }
  0x39   : > { %s2808_s17 = scalar_select %p2182_p5, 1, 0 }
  0x3a   : > { %2810 = sst [smem:[#allocation33_spill]] %s2188_s18  ;;  %p2190_p7 = por %p242_p2, %p63_p10 }
  0x3b   : > { %2809 = sst [smem:[#allocation32_spill]] %s2808_s17  ;;  %s1450_s24 = sshll.u32 %s338_s19, 5 }
  0x3c   : > { %s2811_s13 = scalar_select %p2190_p7, 1, 0 }
  0x3d   : > { %s1608_s20 = sshll.u32 %s1999_s9, 5  ;;  %s2813_s0 = sld [smem:[#allocation39_spill]] }
  0x3e   : > { %2812 = sst [smem:[#allocation34_spill]] %s2811_s13  ;;  %s342_s25 = scalar_lea.vmem [#allocation2], %s1450_s24 }
  0x3f   : > { %s351_s11 = sshll.u32 %s342_s25, 4  ;;  %p1665_p8 = pnand %p1679_p6, %p2168_p11  ;;  %s352_s11 = int_to_ptr.vmem [resolvable:$true] %s351_s11 }
  0x40   : > { %s339_s26 = scalar_lea.sflag [#allocation3], %s338_s19  ;;  %s2814_s3 = smov 8  }
  0x41   : > { %s2815_s4 = smov 128   ;;  %363 = sbr.rel (%p2107_p3) target bundleno = 674 (0x2a2), region = 52 }
  0x43   : > { %s348_s14 = scalar_lea.hbm %s2813_s0, %s1608_s20 }
  0x44   : > { %s349_s2 = sshll.u32 %s348_s14, 4  ;;  %s350_s2 = int_to_ptr.hbm [resolvable:$true] %s349_s2 }
  0x45   : > { %1667 = dma.hbm_to_vmem [thread:$0]  (!%p1665_p8), %s350_s2, 512, %s352_s11, %s339_s26, %s2815_s4, %s2815_s4, %s2814_s3  }
  0x46   : > { %s2207_s5 = sand.u32 1, %s1987_s28  }
  0x47   : > { %2816 = sst [smem:[#allocation35_spill]] %s2207_s5  ;;  %s1454_s1 = sshll.u32 %s2207_s5, 5 }
  0x48   : > { %s366_s20 = scalar_lea.sflag [#allocation3], %s2207_s5  ;;  %s2211_s21 = scalar_lea.vmem [#allocation2], %s1454_s1 }
  0x49   : > { %1954 = dma.done.wait (%p2174_p12), %s366_s20, 512  }
  0x4a   : > { %1956 = vsyncadd (%p2174_p12), %s366_s20, 4294966784 }
  0x4b   : > { %1958 = dma.done.wait (%p2102_p1), [#allocation7], 512  }
  0x4c   : > { %1960 = vsyncadd (%p2102_p1), [#allocation7], 4294966784 }
  0x4d   : > { %1962 = dma.done.wait (%p2102_p1), [#allocation5], 256  }
  0x4e   : > { %1964 = vsyncadd (%p2102_p1), [#allocation5], 4294967040 }
  0x4f   : > { %1966 = dma.done.wait (%p2102_p1), [#allocation10], 80  }
  0x50   : > { %1968 = vsyncadd (%p2102_p1), [#allocation10], 4294967216 }
  0x51   : > { %1970 = dma.done.wait (%p2102_p1), [#allocation13], 80  }
  0x52   : > { %1972 = vsyncadd (%p2102_p1), [#allocation13], 4294967216 }
  0x53   : > { %1974 = dma.done.wait (%p2102_p1), [#allocation16], 16  }
  0x54   : > { %1976 = vsyncadd (%p2102_p1), [#allocation16], 4294967280 }
  0x55   : > { %410 = sfence }
  0x56   : > { %v442_v0 = vld [vmem:[#allocation6 + $0x18] sm:$0xff]  ;;  %v441_v1 = vld [vmem:[#allocation6 + $0x10] sm:$0xff]  ;;  %v440_v2 = vld [vmem:[#allocation6 + $0x8] sm:$0xff]  ;;  %vm444_vm0 = vcmask 261120   ;;  %s2241_s2 = sld [smem:[#allocation8 + $0x202]]  ;;  %vm922_vm1 = vcmask 64512  }
  0x57   : > { %460 = vmatpush.msra.mxu0 %v442_v0  ;;  %510 = vmatpush.msra.mxu2 %v442_v0  ;;  %v439_v3 = vld [vmem:[#allocation6] sm:$0xff]  ;;  %v1466_v5 = vld [vmem:[%s2211_s21 + $0x10] sm:$0xff]  ;;  %v1464_v6 = vld [vmem:[%s2211_s21 + $0x8] sm:$0xff]  ;;  %s2243_s3 = sld [smem:[#allocation8 + $0x201]] }
  0x58   : > { %485 = vmatpush.msra.mxu1 %v442_v0  ;;  %535 = vmatpush.msra.mxu3 %v442_v0  ;;  %v443_v4 = vld [vmem:[%s2211_s21] sm:$0xff]  ;;  %v1468_v7 = vld [vmem:[%s2211_s21 + $0x18] sm:$0xff]  ;;  %s2245_s4 = sld [smem:[#allocation8 + $0x200]] }
  0x59   : > { %461 = vmatpush.msra.mxu0 %v441_v1  ;;  %511 = vmatpush.msra.mxu2 %v441_v1  ;;  %s2247_s15 = sld [smem:[#allocation8 + $0x401]] }
  0x5a   : > { %486 = vmatpush.msra.mxu1 %v441_v1  ;;  %536 = vmatpush.msra.mxu3 %v441_v1  ;;  %s2249_s16 = sld [smem:[#allocation8 + $0x400]] }
  0x5b   : > { %462 = vmatpush.msra.mxu0 %v440_v2  ;;  %512 = vmatpush.msra.mxu2 %v440_v2  ;;  %s2251_s22 = sld [smem:[#allocation8 + $0x203]] }
  0x5c   : > { %487 = vmatpush.msra.mxu1 %v440_v2  ;;  %537 = vmatpush.msra.mxu3 %v440_v2  ;;  %s2253_s23 = sld [smem:[#allocation8 + $0x402]]  ;;  %v716_v8 = vstv %s2241_s2 }
  0x5d   : > { %463 = vmatpush.msra.mxu0 %v439_v3  ;;  %513 = vmatpush.msra.mxu2 %v439_v3  ;;  %s2255_s19 = sld [smem:[#allocation8 + $0x403]]  ;;  %v633_v9 = vstv %s2243_s3 }
  0x5e   : > { %1463 = vmatmul.msk.f32.vlgmr.msra.gmra.mxu0 %vm444_vm0, %v443_v4  ;;  %1467 = vmatmul.msk.f32.vlgmr.msra.gmra.mxu2 %vm444_vm0, %v1466_v5  ;;  %s2257_s24 = sld [smem:[#allocation8 + $0x280]]  ;;  %v550_v10 = vstv %s2245_s4  ;;  %s2014_s4 = smov 120  }
  0x5f   : > { %488 = vmatpush.msra.mxu1 %v439_v3  ;;  %538 = vmatpush.msra.mxu3 %v439_v3  ;;  %s2259_s14 = sld [smem:[#allocation8 + $0x480]]  ;;  %v641_v16 = vstv %s2247_s15 }
  0x60   : > { %1465 = vmatmul.msk.f32.vlgmr.msra.gmra.mxu1 %vm444_vm0, %v1464_v6  ;;  %1469 = vmatmul.msk.f32.vlgmr.msra.gmra.mxu3 %vm444_vm0, %v1468_v7  ;;  %s2261_s25 = sld [smem:[#allocation12]]  ;;  %v558_v17 = vstv %s2249_s16 }
  0x61   : > { %s2263_s11 = sld [smem:[#allocation11]]  ;;  %v799_v19 = vstv %s2251_s22 }
  0x62   : > { %s2265_s26 = sld [smem:[#allocation11 + $0x80]]  ;;  %v724_v20 = vstv %s2253_s23 }
  0x63   : > { %s2267_s1 = sld [smem:[#allocation11 + $0x100]]  ;;  %v807_v21 = vstv %s2255_s19 }
  0x64   : > { %s2269_s20 = sld [smem:[#allocation11 + $0x180]]  ;;  %v570_v15 = vstv %s2257_s24 }
  0x65   : > { %s2271_s21 = sld [smem:[#allocation12 + $0x3]]  ;;  %v578_v24 = vstv %s2259_s14 }
  0x66   : > { %s2273_s0 = sld [smem:[#allocation8 + $0x481]]  ;;  %v876_v25 = vstv %s2261_s25 }
  0x67   : > { %s2275_s6 = sld [smem:[#allocation11 + $0x3]]  ;;  %v880_v22 = vstv %s2263_s11 }
  0x68   : > { %s2277_s7 = sld [smem:[#allocation11 + $0x83]]  ;;  %v884_v27 = vstv %s2265_s26 }
  0x69   : > { %s2279_s12 = sld [smem:[#allocation11 + $0x103]]  ;;  %v888_v36 = vstv %s2267_s1 }
  0x6a   : > { %s2281_s9 = sld [smem:[#allocation11 + $0x183]]  ;;  %v892_v41 = vstv %s2269_s20 }
  0x6b   : > { %s2283_s18 = sld [smem:[#allocation12 + $0x6]]  ;;  %v1023_v28 = vstv %s2271_s21 }
  0x6c   : > { %s2285_s29 = sld [smem:[#allocation11 + $0x6]]  ;;  %v661_v39 = vstv %s2273_s0 }
  0x6d   : > { %s2287_s28 = sld [smem:[#allocation11 + $0x86]]  ;;  %v1027_v26 = vstv %s2275_s6 }
  0x6e   : > { %s2289_s10 = sld [smem:[#allocation11 + $0x106]]  ;;  %v1031_v29 = vstv %s2277_s7  ;;  %s2015_s7 = smov 112  }
  0x6f   : > { %s2294_s13 = sld [smem:[#allocation11 + $0x186]]  ;;  %v1035_v42 = vstv %s2279_s12 }
  0x70   : > { %s2296_s27 = sld [smem:[#allocation12 + $0x2]]  ;;  %v1039_v46 = vstv %s2281_s9 }
  0x71   : > { %s2300_s8 = sld [smem:[#allocation11 + $0x2]]  ;;  %v1170_v32 = vstv %s2283_s18 }
  0x72   : > { %s2305_s2 = sld [smem:[#allocation11 + $0x82]]  ;;  %v1174_v30 = vstv %s2285_s29 }
  0x73   : > { %s2307_s3 = sld [smem:[#allocation11 + $0x1]]  ;;  %v1178_v33 = vstv %s2287_s28 }
  0x74   : > { %s2311_s17 = sld [smem:[#allocation12 + $0x1]]  ;;  %v1182_v47 = vstv %s2289_s10 }
  0x75   : > { %s2315_s30 = sld [smem:[#allocation11 + $0x81]]  ;;  %v1186_v52 = vstv %s2294_s13 }
  0x76   : > { %s2319_s5 = sld [smem:[#allocation11 + $0x5]]  ;;  %v974_v37 = vstv %s2296_s27 }
  0x77   : > { %s2327_s24 = sld [smem:[#allocation11 + $0x102]]  ;;  %v978_v34 = vstv %s2300_s8 }
  0x78   : > { %s2333_s15 = sld [smem:[#allocation8 + $0x281]]  ;;  %v982_v40 = vstv %s2305_s2 }
  0x79   : > { %s2340_s16 = sld [smem:[#allocation8 + $0x482]]  ;;  %v929_v38 = vstv %s2307_s3 }
  0x7a   : > { %s2346_s6 = sld [smem:[#allocation8 + $0x282]]  ;;  %v925_v43 = vstv %s2311_s17 }
  0x7b   : > { %s2354_s28 = sld [smem:[#allocation8 + $0x300]]  ;;  %v933_v48 = vstv %s2315_s30 }
  0x7c   : > { %s2358_s8 = sld [smem:[#allocation8 + $0x301]]  ;;  %v1125_v49 = vstv %s2319_s5 }
  0x7d   : > { %s2369_s27 = sld [smem:[#allocation11 + $0x182]]  ;;  %v986_v53 = vstv %s2327_s24 }
  0x7e   : > { %s2377_s29 = sld [smem:[#allocation11 + $0x101]]  ;;  %v653_v6 = vstv %s2333_s15 }
  0x7f   : > { %s2383_s9 = sld [smem:[#allocation11 + $0x181]] }
  0x80   : > { %s2388_s30 = sld [smem:[#allocation12 + $0x5]] }
  0x81   : > { %s2393_s10 = sld [smem:[#allocation11 + $0x85]] }
  0x82   : > { %s2398_s12 = sld [smem:[#allocation11 + $0x4]] }
  0x83   : > { %s2404_s17 = sld [smem:[#allocation11 + $0x84]] }
  0x84   : > { %s2409_s18 = sld [smem:[#allocation11 + $0x105]] }
  0x85   : > { %s2413_s13 = sld [smem:[#allocation12 + $0x4]] }
  0x86   : > { %s2418_s22 = sld [smem:[#allocation11 + $0x185]] }
  0x87   : > { %s2426_s23 = sld [smem:[#allocation11 + $0x104]] }
  0x88   : > { %s2429_s14 = sld [smem:[#allocation11 + $0x184]] }
  0x89   : > { %s2437_s0 = sld [smem:[#allocation11 + $0x7]] }
  0x8a   : > { %s2444_s25 = sld [smem:[#allocation12 + $0x7]] }
  0x8b   : > { %s2452_s19 = sld [smem:[#allocation11 + $0x87]] }
  0x8c   : > { %s2459_s5 = sld [smem:[#allocation11 + $0x107]] }
  0x8d   : > { %s2463_s11 = sld [smem:[#allocation8 + $0x500]] }
  0x8e   : > { %s2470_s26 = sld [smem:[#allocation11 + $0x187]] }
  0x8f   : > { %s2473_s1 = sld [smem:[#allocation8 + $0x283]] }
  0x90   : > { %s1502_s20 = sld [smem:[#allocation8 + $0x302]] }
  0x91   : > { %s1490_s21 = sld [smem:[#allocation8 + $0x501]] }
  0x92   : > { %s1513_s2 = sld [smem:[#allocation8 + $0x483]] }
  0x93   : > { %s1515_s3 = sld [smem:[#allocation8 + $0x303]] }
  0x94   : > { %s1479_s24 = sld [smem:[#allocation8 + $0x380]] }
  0x95   : > { %s1503_s15 = sld [smem:[#allocation8 + $0x502]] }
  0xdb   : > { %v2298_v11 = vpop.f32.mrf.mxu0 }
  0xdc   : > { %v717_v12 = vmul.f32 %v716_v8, %v2298_v11  ;;  %v634_v13 = vmul.f32 %v633_v9, %v2298_v11  ;;  %v551_v14 = vmul.f32 %v550_v10, %v2298_v11  ;;  %v642_v31 = vmul.f32 %v641_v16, %v2298_v11 }
  0xdd   : > { %v2321_v18 = vpop.f32.mrf.mxu1  ;;  %v559_v35 = vmul.f32 %v558_v17, %v2298_v11  ;;  %v800_v50 = vmul.f32 %v799_v19, %v2298_v11  ;;  %v881_v51 = vmul.f32 %v880_v22, %v2298_v11  ;;  %v725_v55 = vmul.f32 %v724_v20, %v2298_v11 }
  0xde   : > { %719 = vrot.lane.b32.xlu2 %v717_v12, %s2014_s4  ;;  %636 = vrot.lane.b32.xlu1 %v634_v13, %s2014_s4  ;;  %v571_v23 = vmul.f32 %v570_v15, %v2321_v18  ;;  %v579_v54 = vmul.f32 %v578_v24, %v2321_v18  ;;  %v885_v56 = vmul.f32 %v884_v27, %v2321_v18  ;;  %v990_v17 = vstv %s2369_s27  ;;  %s1505_s27 = sld [smem:[#allocation8 + $0x382]] }
  0xdf   : > { %553 = vrot.lane.b32.xlu0 %v551_v14, %s2014_s4  ;;  %v1028_v57 = vmul.f32 %v1027_v26, %v2298_v11  ;;  %v882_v58 = vadd.f32 %v881_v51, %v876_v25  ;;  %v1032_v61 = vmul.f32 %v1031_v29, %v2321_v18  ;;  %v1175_v0 = vmul.f32 %v1174_v30, %v2298_v11 }
  0xe0   : > { %v1179_v1 = vmul.f32 %v1178_v33, %v2321_v18  ;;  %v979_v4 = vmul.f32 %v978_v34, %v2298_v11  ;;  %v983_v5 = vmul.f32 %v982_v40, %v2321_v18  ;;  %v930_v14 = vmul.f32 %v929_v38, %v2298_v11 }
  0xe1   : > { %v2363_v44 = vpop.f32.mrf.mxu2  ;;  %v1029_v62 = vadd.f32 %v1028_v57, %v1023_v28  ;;  %v886_v2 = vadd.f32 %v885_v56, %v882_v58  ;;  %v1176_v8 = vadd.f32 %v1175_v0, %v1170_v32  ;;  %v934_v19 = vmul.f32 %v933_v48, %v2321_v18 }
  0xe2   : > { %v889_v59 = vmul.f32 %v888_v36, %v2363_v44  ;;  %v1036_v63 = vmul.f32 %v1035_v42, %v2363_v44  ;;  %v1183_v9 = vmul.f32 %v1182_v47, %v2363_v44  ;;  %v980_v12 = vadd.f32 %v979_v4, %v974_v37 }
  0xe3   : > { %v2365_v45 = vpop.f32.mrf.mxu3  ;;  %v1033_v7 = vadd.f32 %v1032_v61, %v1029_v62  ;;  %v987_v13 = vmul.f32 %v986_v53, %v2363_v44  ;;  %v1180_v16 = vadd.f32 %v1179_v1, %v1176_v8  ;;  %v937_v24 = vstv %s2377_s29  ;;  %s1493_s29 = sld [smem:[#allocation8 + $0x581]] }
  0xe4   : > { %v893_v60 = vmul.f32 %v892_v41, %v2365_v45  ;;  %v1040_v3 = vmul.f32 %v1039_v46, %v2365_v45  ;;  %v890_v10 = vadd.f32 %v889_v59, %v886_v2  ;;  %v984_v22 = vadd.f32 %v983_v5, %v980_v12 }
  0xe5   : > { %v1037_v15 = vadd.f32 %v1036_v63, %v1033_v7  ;;  %v662_v25 = vmul.f32 %v661_v39, %v2321_v18  ;;  %v1184_v27 = vadd.f32 %v1183_v9, %v1180_v16  ;;  %v1187_v28 = vmul.f32 %v1186_v52, %v2365_v45 }
  0xe6   : > { %573 = vrot.lane.b32.xlu2 %v571_v23, %s2014_s4  ;;  %644 = vrot.lane.b32.xlu1 %v642_v31, %s2015_s7  ;;  %v2415_v20 = vadd.f32 %v893_v60, %v890_v10  ;;  %v931_v23 = vadd.f32 %v930_v14, %v925_v43  ;;  %v654_v29 = vmul.f32 %v653_v6, %v2321_v18  ;;  %v941_v34 = vstv %s2383_s9  ;;  %s1519_s9 = sld [smem:[#allocation8 + $0x583]] }
  0xe7   : > { %561 = vrot.lane.b32.xlu0 %v559_v35, %s2015_s7  ;;  %v2423_v26 = vadd.f32 %v1040_v3, %v1037_v15  ;;  %v988_v30 = vadd.f32 %v987_v13, %v984_v22  ;;  %v808_v32 = vmul.f32 %v807_v21, %v2298_v11  ;;  %v991_v33 = vmul.f32 %v990_v17, %v2365_v45 }
  0xe8   : > { %v935_v31 = vadd.f32 %v934_v19, %v931_v23  ;;  %v1129_v35 = vstv %s2393_s10  ;;  %v938_v36 = vmul.f32 %v937_v24, %v2363_v44  ;;  %v1121_v37 = vstv %s2388_s30  ;;  %s1518_s30 = sld [smem:[#allocation8 + $0x383]] }
  0xe9   : > { %v1126_v38 = vmul.f32 %v1125_v49, %v2298_v11  ;;  %v2448_v21 = vadd.f32 %v1187_v28, %v1184_v27  ;;  %v1076_v39 = vstv %s2398_s12  ;;  %v1080_v40 = vstv %s2404_s17  ;;  %s1482_s10 = sld [smem:[#allocation8 + $0x1]] }
  0xea   : > { %v590_v41 = vstv %s2354_s28  ;;  %v942_v42 = vmul.f32 %v941_v34, %v2365_v45  ;;  %v1130_v43 = vmul.f32 %v1129_v35, %v2321_v18  ;;  %v1133_v46 = vstv %s2409_s18  ;;  %s1480_s28 = sld [smem:[#allocation8 + $0x580]] }
  0xeb   : > { %v744_v47 = vstv %s2340_s16  ;;  %v736_v48 = vstv %s2346_s6  ;;  %v2465_v49 = vadd.f32 %v991_v33, %v988_v30  ;;  %v939_v51 = vadd.f32 %v938_v36, %v935_v31  ;;  %s1516_s16 = sld [smem:[#allocation8 + $0x503]] }
  0xec   : > { %v1127_v52 = vadd.f32 %v1126_v38, %v1121_v37  ;;  %v1137_v53 = vstv %s2418_s22  ;;  %v1134_v56 = vmul.f32 %v1133_v46, %v2363_v44  ;;  %v1081_v57 = vmul.f32 %v1080_v40, %v2321_v18  ;;  %s1492_s6 = sld [smem:[#allocation8 + $0x381]] }
  0xed   : > { %v1084_v58 = vstv %s2426_s23  ;;  %v2478_v59 = vadd.f32 %v942_v42, %v939_v51  ;;  %v745_v62 = vmul.f32 %v744_v47, %v2321_v18  ;;  %v1138_v63 = vmul.f32 %v1137_v53, %v2365_v45  ;;  %s545_s12 = sld [smem:[#allocation8]] }
  0xee   : > { %581 = vrot.lane.b32.xlu2 %v579_v54, %s2015_s7  ;;  %802 = vrot.lane.b32.xlu1 %v800_v50, %s2014_s4  ;;  %v1072_v50 = vstv %s2413_s13  ;;  %v1077_v54 = vmul.f32 %v1076_v39, %v2298_v11  ;;  %v1131_v60 = vadd.f32 %v1130_v43, %v1127_v52  ;;  %v1085_v0 = vmul.f32 %v1084_v58, %v2363_v44  ;;  %s1481_s17 = sld [smem:[#allocation9 + $0x1]] }
  0xef   : > { %727 = vrot.lane.b32.xlu0 %v725_v55, %s2015_s7  ;;  %v591_v55 = vmul.f32 %v590_v41, %v2363_v44  ;;  %v1223_v1 = vstv %s2437_s0  ;;  %v737_v2 = vmul.f32 %v736_v48, %v2321_v18  ;;  %v1088_v5 = vstv %s2429_s14  ;;  %s543_s18 = sld [smem:[#allocation9]] }
  0xf0   : > { %v1078_v61 = vadd.f32 %v1077_v54, %v1072_v50  ;;  %v1135_v3 = vadd.f32 %v1134_v56, %v1131_v60  ;;  %v1219_v6 = vstv %s2444_s25  ;;  %v1089_v7 = vmul.f32 %v1088_v5, %v2365_v45  ;;  %s1495_s13 = sld [smem:[#allocation8 + $0x2]] }
  0xf1   : > { %v1224_v8 = vmul.f32 %v1223_v1, %v2298_v11  ;;  %v1227_v9 = vstv %s2452_s19  ;;  %v1231_v10 = vstv %s2459_s5  ;;  %v673_v12 = vstv %s2358_s8  ;;  %s1506_s8 = sld [smem:[#allocation8 + $0x582]] }
  0xf2   : > { %v1082_v4 = vadd.f32 %v1081_v57, %v1078_v61  ;;  %v2495_v13 = vadd.f32 %v1138_v63, %v1135_v3  ;;  %v1228_v15 = vmul.f32 %v1227_v9, %v2321_v18  ;;  %v598_v16 = vstv %s2463_s11  ;;  %s1485_s22 = sld [smem:[#allocation8 + $0x81]] }
  0xf3   : > { %v1225_v17 = vadd.f32 %v1224_v8, %v1219_v6  ;;  %v1232_v19 = vmul.f32 %v1231_v10, %v2363_v44  ;;  %v1235_v22 = vstv %s2470_s26  ;;  %v819_v23 = vstv %s2473_s1  ;;  %s1472_s23 = sld [smem:[#allocation8 + $0x80]] }
  0xf4   : > { %v1086_v14 = vadd.f32 %v1085_v0, %v1082_v4  ;;  %v1236_v27 = vmul.f32 %v1235_v22, %v2365_v45  ;;  %v674_v28 = vmul.f32 %v673_v12, %v2363_v44  ;;  %v820_v30 = vmul.f32 %v819_v23, %v2321_v18  ;;  %s1508_s14 = sld [smem:[#allocation8 + $0x3]] }
  0xf5   : > { %v756_v33 = vstv %s1502_s20  ;;  %v681_v34 = vstv %s1490_s21  ;;  %v827_v35 = vstv %s1513_s2  ;;  %v610_v39 = vstv %s1479_s24  ;;  %s1498_s0 = sld [smem:[#allocation8 + $0x82]] }
  0xf6   : > { %664 = vrot.lane.b32.xlu2 %v662_v25, %s2015_s7  ;;  %810 = vrot.lane.b32.xlu1 %v808_v32, %s2015_s7  ;;  %v2502_v24 = vadd.f32 %v1089_v7, %v1086_v14  ;;  %v1229_v25 = vadd.f32 %v1228_v15, %v1225_v17  ;;  %v757_v36 = vmul.f32 %v756_v33, %v2363_v44  ;;  %v839_v40 = vstv %s1515_s3  ;;  %s1507_s25 = sld [smem:[#allocation9 + $0x3]] }
  0xf7   : > { %656 = vrot.lane.b32.xlu0 %v654_v29, %s2014_s4  ;;  %v599_v29 = vmul.f32 %v598_v16, %v2363_v44  ;;  %v682_v37 = vmul.f32 %v681_v34, %v2363_v44  ;;  %v828_v38 = vmul.f32 %v827_v35, %v2321_v18  ;;  %v764_v41 = vstv %s1503_s15  ;;  %s1511_s19 = sld [smem:[#allocation8 + $0x83]] }
  0xf8   : > { %v1233_v31 = vadd.f32 %v1232_v19, %v1229_v25  ;;  %v611_v42 = vmul.f32 %v610_v39, %v2365_v45  ;;  %v840_v43 = vmul.f32 %v839_v40, %v2363_v44  ;;  %v765_v46 = vmul.f32 %v764_v41, %v2363_v44  ;;  %s1488_s5 = sld [smem:[#allocation8 + $0x101]] }
  0xf9   : > { %v847_v47 = vstv %s1516_s16  ;;  %v693_v48 = vstv %s1492_s6  ;;  %v618_v50 = vstv %s1480_s28  ;;  %v784_v54 = vstv %s1506_s8  ;;  %s1501_s11 = sld [smem:[#allocation8 + $0x102]] }
  0xfa   : > { %v2511_v32 = vadd.f32 %v1236_v27, %v1233_v31  ;;  %v848_v51 = vmul.f32 %v847_v47, %v2363_v44  ;;  %v694_v52 = vmul.f32 %v693_v48, %v2365_v45  ;;  %v619_v53 = vmul.f32 %v618_v50, %v2365_v45  ;;  %s2550_s26 = sld [smem:[#allocation8 + $0x103]] }
  0xfb   : > { %v701_v56 = vstv %s1493_s29  ;;  %v785_v57 = vmul.f32 %v784_v54, %v2365_v45  ;;  %v867_v61 = vstv %s1519_s9  ;;  %v629_v4 = vstv %s1482_s10  ;;  %s1478_s1 = sld [smem:[#allocation8 + $0x180]] }
  0xfc   : > { %v702_v60 = vmul.f32 %v701_v56, %v2365_v45  ;;  %v868_v63 = vmul.f32 %v867_v61, %v2365_v45  ;;  %v546_v5 = vstv %s545_s12  ;;  %v630_v7 = vmul.f32 %v629_v4, %v2298_v11  ;;  %s2553_s20 = sld [smem:[#allocation8 + $0x181]] }
  0xfd   : > { %v627_v9 = vstv %s1481_s17  ;;  %v547_v10 = vmul.f32 %v546_v5, %v2298_v11  ;;  %v544_v12 = vstv %s543_s18  ;;  %v649_v17 = vstv %s1485_s22  ;;  %s2555_s21 = sld [smem:[#allocation8 + $0x182]] }
  0xfe   : > { %747 = vrot.lane.b32.xlu2 %v745_v62, %s2015_s7  ;;  %593 = vrot.lane.b32.xlu1 %v591_v55, %s2014_s4  ;;  %v776_v55 = vstv %s1505_s27  ;;  %v859_v62 = vstv %s1518_s30  ;;  %v631_v15 = vadd.f32 %v630_v7, %v627_v9  ;;  %s2557_s2 = sld [smem:[#allocation8 + $0x183]] }
  0xff   : > { %739 = vrot.lane.b32.xlu0 %v737_v2, %s2014_s4  ;;  %v777_v58 = vmul.f32 %v776_v55, %v2365_v45  ;;  %v860_v0 = vmul.f32 %v859_v62, %v2365_v45  ;;  %v548_v16 = vadd.f32 %v547_v10, %v544_v12  ;;  %v712_v19 = vstv %s1495_s13  ;;  %s2559_s3 = sld [smem:[#allocation14 + $0x2]] }
 0x100   : > { %v566_v23 = vstv %s1472_s23  ;;  %v713_v31 = vmul.f32 %v712_v19, %v2298_v11  ;;  %v795_v41 = vstv %s1508_s14  ;;  %s2561_s24 = sld [smem:[#allocation14 + $0x1]]  ;;  %v752_v9 = vstv %s1501_s11 }
 0x101   : > { %v567_v33 = vmul.f32 %v566_v23, %v2321_v18  ;;  %s2563_s15 = sld [smem:[#allocation15 + $0x2]] }
 0x102   : > { %s2565_s16 = sld [smem:[#allocation15 + $0x1]] }
 0x103   : > { %s2567_s6 = sld [smem:[#allocation15]] }
 0x104   : > { %s2570_s28 = sld [smem:[#allocation14]] }
 0x105   : > { %s2572_s8 = sld [smem:[#allocation15 + $0x5]] }
 0x106   : > { %676 = vrot.lane.b32.xlu2 %v674_v28, %s2014_s4  ;;  %601 = vrot.lane.b32.xlu1 %v599_v29, %s2015_s7  ;;  %s2574_s27 = sld [smem:[#allocation14 + $0x5]] }
 0x107   : > { %822 = vrot.lane.b32.xlu0 %v820_v30, %s2014_s4  ;;  %v650_v30 = vmul.f32 %v649_v17, %v2321_v18  ;;  %v606_v17 = vstv %s1478_s1  ;;  %s2576_s29 = sld [smem:[#allocation14 + $0x82]] }
 0x108   : > { %s2578_s9 = sld [smem:[#allocation14 + $0x81]] }
 0x109   : > { %s2581_s30 = sld [smem:[#allocation14 + $0x102]] }
 0x10a   : > { %s2583_s10 = sld [smem:[#allocation14 + $0x101]] }
 0x10b   : > { %s2585_s12 = sld [smem:[#allocation14 + $0x80]] }
 0x10c   : > { %s2587_s17 = sld [smem:[#allocation14 + $0x100]] }
 0x10d   : > { %s2589_s18 = sld [smem:[#allocation14 + $0x85]] }
 0x10e   : > { %759 = vrot.lane.b32.xlu2 %v757_v36, %s2014_s4  ;;  %684 = vrot.lane.b32.xlu1 %v682_v37, %s2015_s7  ;;  %s2592_s13 = sld [smem:[#allocation14 + $0x182]] }
 0x10f   : > { %830 = vrot.lane.b32.xlu0 %v828_v38, %s2015_s7  ;;  %s2595_s22 = sld [smem:[#allocation14 + $0x105]] }
 0x110   : > { %s2597_s23 = sld [smem:[#allocation15 + $0x4]] }
 0x111   : > { %s2607_s14 = sld [smem:[#allocation14 + $0x104]] }
 0x112   : > { %s2620_s11 = sld [smem:[#allocation14 + $0x6]] }
 0x113   : > { %s2627_s1 = sld [smem:[#allocation15 + $0x7]] }
 0x116   : > { %842 = vrot.lane.b32.xlu2 %v840_v43, %s2014_s4  ;;  %767 = vrot.lane.b32.xlu1 %v765_v46, %s2015_s7  ;;  %v732_v43 = vstv %s1498_s0  ;;  %s2609_s0 = sld [smem:[#allocation15 + $0x3]] }
 0x117   : > { %613 = vrot.lane.b32.xlu0 %v611_v42, %s2014_s4  ;;  %v733_v56 = vmul.f32 %v732_v43, %v2321_v18  ;;  %v855_v43 = vstv %s2557_s2  ;;  %s2633_s2 = sld [smem:[#allocation14 + $0x107]] }
 0x11e   : > { %850 = vrot.lane.b32.xlu2 %v848_v51, %s2015_s7  ;;  %696 = vrot.lane.b32.xlu1 %v694_v52, %s2014_s4  ;;  %v796_v51 = vmul.f32 %v795_v41, %v2298_v11 }
 0x11f   : > { %621 = vrot.lane.b32.xlu0 %v619_v53, %s2015_s7  ;;  %v793_v53 = vstv %s1507_s25  ;;  %s2612_s25 = sld [smem:[#allocation14 + $0x3]] }
 0x126   : > { %787 = vrot.lane.b32.xlu2 %v785_v57, %s2015_s7  ;;  %779 = vrot.lane.b32.xlu1 %v777_v58, %s2014_s4  ;;  %v797_v58 = vadd.f32 %v796_v51, %v793_v53 }
 0x127   : > { %704 = vrot.lane.b32.xlu0 %v702_v60, %s2015_s7  ;;  %v815_v60 = vstv %s1511_s19  ;;  %s2615_s19 = sld [smem:[#allocation14 + $0x83]] }
 0x12d   : > { %2817 = sst [smem:[#allocation36_spill]] %s2615_s19 }
 0x12e   : > { %870 = vrot.lane.b32.xlu1 %v868_v63, %s2015_s7  ;;  %s1475_s7 = sld [smem:[#allocation8 + $0x100]] }
 0x12f   : > { %862 = vrot.lane.b32.xlu0 %v860_v0, %s2014_s4  ;;  %s1494_s4 = sld [smem:[#allocation9 + $0x2]] }
 0x130   : > { %s2636_s19 = sld [smem:[#allocation14 + $0x86]] }
 0x134   : > { %v586_v38 = vstv %s1475_s7  ;;  %s2603_s7 = sld [smem:[#allocation14 + $0x84]] }
 0x135   : > { %v710_v35 = vstv %s1494_s4  ;;  %v587_v48 = vmul.f32 %v586_v38, %v2363_v44  ;;  %s2600_s4 = sld [smem:[#allocation14 + $0x4]] }
 0x136   : > { %v714_v39 = vadd.f32 %v713_v31, %v710_v35 }
 0x138   : > { %v720_v1 = vpop.permute.xlu2 %719 }
 0x139   : > { %v722_v46 = vadd.f32 %v720_v1, %v714_v39 }
 0x140   : > { %v574_v2 = vpop.permute.xlu2 %573 }
 0x148   : > { %v582_v3 = vpop.permute.xlu2 %581 }
 0x150   : > { %v637_v6 = vpop.permute.xlu1 %636  ;;  %v665_v14 = vpop.permute.xlu2 %664 }
 0x151   : > { %v554_v8 = vpop.permute.xlu0 %553  ;;  %v639_v22 = vadd.f32 %v637_v6, %v631_v15  ;;  %v753_v15 = vmul.f32 %v752_v9, %v2363_v44  ;;  %v1025_v9 = vstv %s2609_s0 }
 0x152   : > { %v556_v25 = vadd.f32 %v554_v8, %v548_v16 }
 0x158   : > { %v645_v27 = vpop.permute.xlu1 %644  ;;  %v748_v42 = vpop.permute.xlu2 %747 }
 0x159   : > { %v647_v28 = vadd.f32 %v645_v27, %v639_v22  ;;  %v562_v29 = vpop.permute.xlu0 %561  ;;  %v607_v27 = vmul.f32 %v606_v17, %v2365_v45 }
 0x15a   : > { %v564_v34 = vadd.f32 %v562_v29, %v556_v25 }
 0x15b   : > { %v651_v36 = vadd.f32 %v650_v30, %v647_v28  ;;  %v689_v30 = vstv %s2553_s20  ;;  %s2629_s20 = sld [smem:[#allocation15 + $0x6]] }
 0x15c   : > { %v568_v37 = vadd.f32 %v567_v33, %v564_v34  ;;  %v835_v33 = vstv %s2550_s26  ;;  %v690_v38 = vmul.f32 %v689_v30, %v2365_v45  ;;  %s2623_s26 = sld [smem:[#allocation14 + $0x103]]  ;;  %v1100_v30 = vstv %s2607_s14 }
 0x15d   : > { %v836_v39 = vmul.f32 %v835_v33, %v2363_v44 }
 0x15e   : > { %v576_v40 = vadd.f32 %v574_v2, %v568_v37  ;;  %v816_v2 = vmul.f32 %v815_v60, %v2321_v18  ;;  %v896_v60 = vstv %s2570_s28  ;;  %s2820_s28 = sld [smem:[#allocation36_spill]] }
 0x160   : > { %v803_v47 = vpop.permute.xlu1 %802  ;;  %v584_v50 = vadd.f32 %v582_v3, %v576_v40  ;;  %v677_v63 = vpop.permute.xlu2 %676  ;;  %v669_v3 = vstv %s1488_s5  ;;  %s2617_s5 = sld [smem:[#allocation14 + $0x7]] }
 0x161   : > { %v728_v52 = vpop.permute.xlu0 %727  ;;  %v805_v61 = vadd.f32 %v803_v47, %v797_v58  ;;  %v670_v6 = vmul.f32 %v669_v3, %v2363_v44  ;;  %v772_v47 = vstv %s2555_s21  ;;  %s2631_s21 = sld [smem:[#allocation14 + $0x87]]  ;;  %v994_v58 = vstv %s2559_s3 }
 0x162   : > { %v730_v54 = vadd.f32 %v728_v52, %v722_v46  ;;  %v588_v55 = vadd.f32 %v587_v48, %v584_v50  ;;  %v856_v52 = vmul.f32 %v855_v43, %v2365_v45  ;;  %2818 = sst [smem:[#allocation37_spill]] %s2623_s26  ;;  %v1190_v3 = vstv %s2620_s11 }
 0x163   : > { %s2642_s26 = sld [smem:[#allocation14 + $0x106]] }
 0x164   : > { %v734_v57 = vadd.f32 %v733_v56, %v730_v54  ;;  %s2652_s3 = sld [smem:[#allocation14 + $0x180]] }
 0x167   : > { %2819 = sst [smem:[#allocation38_spill]] %s2631_s21 }
 0x168   : > { %v811_v62 = vpop.permute.xlu1 %810  ;;  %v760_v12 = vpop.permute.xlu2 %759  ;;  %s2644_s21 = sld [smem:[#allocation14 + $0x181]] }
 0x169   : > { %v813_v0 = vadd.f32 %v811_v62, %v805_v61  ;;  %v657_v1 = vpop.permute.xlu0 %656  ;;  %v1141_v61 = vstv %s2574_s27  ;;  %v1092_v62 = vstv %s2600_s4  ;;  %s2687_s27 = sld [smem:[#allocation14 + $0x187]] }
 0x16a   : > { %v659_v11 = vadd.f32 %v657_v1, %v651_v36  ;;  %v1043_v1 = vstv %s2612_s25 }
 0x16b   : > { %v817_v4 = vadd.f32 %v816_v2, %v813_v0  ;;  %v1239_v2 = vstv %s2617_s5 }
 0x16c   : > { %v667_v5 = vadd.f32 %v665_v14, %v659_v11 }
 0x16e   : > { %v671_v7 = vadd.f32 %v670_v6, %v667_v5  ;;  %v927_v5 = vstv %s2565_s16  ;;  %v878_v6 = vstv %s2567_s6  ;;  %s2822_s16 = sld [smem:[#allocation38_spill]] }
 0x16f   : > { %s2663_s6 = sld [smem:[#allocation14 + $0x184]] }
 0x170   : > { %v594_v18 = vpop.permute.xlu1 %593  ;;  %v843_v29 = vpop.permute.xlu2 %842  ;;  %v679_v31 = vadd.f32 %v677_v63, %v671_v7  ;;  %v1123_v7 = vstv %s2572_s8  ;;  %s2685_s8 = sld [smem:[#allocation14 + $0x183]] }
 0x171   : > { %v740_v8 = vpop.permute.xlu0 %739  ;;  %v596_v19 = vadd.f32 %v594_v18, %v588_v55  ;;  %v773_v55 = vmul.f32 %v772_v47, %v2365_v45  ;;  %v945_v45 = vstv %s2561_s24  ;;  %s2655_s24 = sld [smem:[#allocation14 + $0x185]] }
 0x172   : > { %v742_v10 = vadd.f32 %v740_v8, %v734_v57  ;;  %v1074_v8 = vstv %s2597_s23 }
 0x174   : > { %v750_v14 = vadd.f32 %v748_v42, %v742_v10  ;;  %v1221_v10 = vstv %s2627_s1 }
 0x176   : > { %v754_v16 = vadd.f32 %v753_v15, %v750_v14  ;;  %v949_v14 = vstv %s2578_s9  ;;  %v900_v15 = vstv %s2585_s12  ;;  %s2016_s9 = smov 24   ;;  %s2826_s12 = sld [smem:[#allocation28_spill]] }
 0x178   : > { %v602_v22 = vpop.permute.xlu1 %601  ;;  %v851_v48 = vpop.permute.xlu2 %850  ;;  %v762_v50 = vadd.f32 %v760_v12, %v754_v16  ;;  %v998_v12 = vstv %s2576_s29  ;;  %v1172_v16 = vstv %s2629_s20  ;;  %s2689_s29 = sld [smem:[#allocation14 + $0x186]] }
 0x179   : > { %v604_v23 = vadd.f32 %v602_v22, %v596_v19  ;;  %v823_v25 = vpop.permute.xlu0 %822  ;;  %v1002_v19 = vstv %s2581_s30  ;;  %s2017_s30 = smov 104  }
 0x17a   : > { %v825_v34 = vadd.f32 %v823_v25, %v817_v4  ;;  %v976_v4 = vstv %s2563_s15  ;;  %s2821_s15 = sld [smem:[#allocation37_spill]]  ;;  %v953_v25 = vstv %s2583_s10 }
 0x17b   : > { %v608_v28 = vadd.f32 %v607_v27, %v604_v23  ;;  %v1145_v23 = vstv %s2589_s18  ;;  %v904_v27 = vstv %s2587_s17  ;;  %s2825_s10 = sld [smem:[#allocation35_spill]] }
 0x180   : > { %v685_v35 = vpop.permute.xlu1 %684  ;;  %v1051_v33 = vstv %s2821_s15 }
 0x181   : > { %v687_v36 = vadd.f32 %v685_v35, %v679_v31  ;;  %v831_v37 = vpop.permute.xlu0 %830  ;;  %v1047_v31 = vstv %s2820_s28  ;;  %s1462_s17 = sshll.u32 %s2825_s10, 6 }
 0x182   : > { %v833_v40 = vadd.f32 %v831_v37, %v825_v34  ;;  %v1243_v34 = vstv %s2822_s16  ;;  %v1194_v37 = vstv %s2636_s19  ;;  %s438_s18 = scalar_lea.vmem [#allocation17], %s1462_s17  ;;  %s1268_s19 = scalar_lea.sflag [#allocation4], %s2825_s10 }
 0x183   : > { %v2605_v41 = vadd.f32 %v690_v38, %v687_v36  ;;  %v1247_v36 = vstv %s2633_s2  ;;  %s1281_s0 = sshll.u32 %s438_s18, 4  ;;  %s1282_s0 = int_to_ptr.vmem [resolvable:$true] %s1281_s0 }
 0x184   : > { %v837_v42 = vadd.f32 %v836_v39, %v833_v40 }
 0x186   : > { %v845_v46 = vadd.f32 %v843_v29, %v837_v42  ;;  %v1096_v29 = vstv %s2603_s7  ;;  %s2828_s7 = sld [smem:[#allocation47_spill]] }
 0x188   : > { %v768_v44 = vpop.permute.xlu1 %767  ;;  %v853_v51 = vadd.f32 %v851_v48, %v845_v46 }
 0x189   : > { %v770_v53 = vadd.f32 %v768_v44, %v762_v50  ;;  %v614_v54 = vpop.permute.xlu0 %613 }
 0x18a   : > { %v2625_v56 = vadd.f32 %v856_v52, %v853_v51  ;;  %v616_v63 = vadd.f32 %v614_v54, %v608_v28  ;;  %v1149_v28 = vstv %s2595_s22  ;;  %v788_v52 = vpop.permute.xlu2 %787  ;;  %v957_v54 = vstv %s2644_s21  ;;  %s1609_s22 = sshll.u32 %s2826_s12, 6 }
 0x18b   : > { %v774_v57 = vadd.f32 %v773_v55, %v770_v53  ;;  %v908_v55 = vstv %s2652_s3 }
 0x18c   : > { %s1280_s14 = scalar_lea.hbm %s2828_s7, %s1609_s22  ;;  %s1921_s20 = scalar_lea.hbm %s2828_s7, 128 }
 0x18d   : > { %s1283_s25 = sshll.u32 %s1280_s14, 4  ;;  %s1284_s25 = int_to_ptr.hbm [resolvable:$true] %s1283_s25 }
 0x18e   : > { %s1915_s5 = sshra.s32 %s1284_s25, 4  ;;  %s1916_s5 = int_to_ptr.hbm [resolvable:$true] %s1915_s5 }
 0x18f   : > { %s1917_s11 = scalar_lea.hbm %s1916_s5, 64  ;;  %p1922_p10 = scmp.lt.s32.totalorder %s1916_s5, %s2828_s7 }
 0x190   : > { %v697_v0 = vpop.permute.xlu1 %696  ;;  %p1918_p1 = scmp.ne.s32.totalorder %s1916_s5, %s1917_s11  ;;  %p1923_p11 = scmp.lt.s32.totalorder %s1921_s20, %s1917_s11 }
 0x191   : > { %v622_v11 = vpop.permute.xlu0 %621  ;;  %v699_v39 = vadd.f32 %v697_v0, %v2605_v41 }
 0x192   : > { %v624_v18 = vadd.f32 %v622_v11, %v616_v63  ;;  %p1919_p3 = pnand %p1918_p1, %p2182_p5  ;;  %p1924_p12 = por %p1923_p11, %p1922_p10 }
 0x194   : > { %v625_v17 = vmax.f32 %v624_v18, 0.0  ;;  %v1104_v18 = vstv %s2663_s6  ;;  %p1920_p9 = pneg %p1919_p3 }
 0x196   : > { %v995_v35 = vmul.f32 %v994_v58, %v625_v17  ;;  %v946_v42 = vmul.f32 %v945_v45, %v625_v17  ;;  %v897_v43 = vmul.f32 %v896_v60, %v625_v17  ;;  %v1142_v46 = vmul.f32 %v1141_v61, %v625_v17  ;;  %p1925_p13 = pnand %p1924_p12, %p1920_p9 }
 0x197   : > { %v1093_v50 = vmul.f32 %v1092_v62, %v625_v17  ;;  %v1044_v44 = vmul.f32 %v1043_v1, %v625_v17  ;;  %v1240_v51 = vmul.f32 %v1239_v2, %v625_v17  ;;  %v1153_v58 = vstv %s2655_s24 }
 0x198   : > { %v780_v40 = vpop.permute.xlu1 %779  ;;  %v996_v11 = vadd.f32 %v995_v35, %v976_v4  ;;  %v1191_v22 = vmul.f32 %v1190_v3, %v625_v17  ;;  %v947_v0 = vadd.f32 %v946_v42, %v927_v5  ;;  %v898_v38 = vadd.f32 %v897_v43, %v878_v6 }
 0x199   : > { %v782_v47 = vadd.f32 %v780_v40, %v774_v57  ;;  %v705_v48 = vpop.permute.xlu0 %704  ;;  %v1143_v45 = vadd.f32 %v1142_v46, %v1123_v7  ;;  %v1094_v61 = vadd.f32 %v1093_v50, %v1074_v8  ;;  %v1045_v57 = vadd.f32 %v1044_v44, %v1025_v9 }
 0x19a   : > { %v707_v53 = vadd.f32 %v705_v48, %v699_v39  ;;  %v1241_v62 = vadd.f32 %v1240_v51, %v1221_v10  ;;  %v2823_v50 = vstv %s2642_s26 }
 0x19b   : > { %v790_v63 = vadd.f32 %v788_v52, %v782_v47  ;;  %v1055_v52 = vstv %s2685_s8 }
 0x19c   : > { %v708_v41 = vmax.f32 %v707_v53, 0.0  ;;  %v1251_v53 = vstv %s2687_s27 }
 0x19d   : > { %v791_v60 = vmax.f32 %v790_v63, 0.0 }
 0x19e   : > { %v999_v1 = vmul.f32 %v998_v12, %v708_v41  ;;  %v950_v2 = vmul.f32 %v949_v14, %v708_v41  ;;  %v901_v39 = vmul.f32 %v900_v15, %v708_v41  ;;  %v1146_v40 = vmul.f32 %v1145_v23, %v708_v41 }
 0x19f   : > { %v1003_v47 = vmul.f32 %v1002_v19, %v791_v60  ;;  %v954_v4 = vmul.f32 %v953_v25, %v791_v60  ;;  %v905_v35 = vmul.f32 %v904_v27, %v791_v60  ;;  %v1150_v3 = vmul.f32 %v1149_v28, %v791_v60 }
 0x1a0   : > { %v1000_v5 = vadd.f32 %v999_v1, %v996_v11  ;;  %v951_v6 = vadd.f32 %v950_v2, %v947_v0  ;;  %v902_v7 = vadd.f32 %v901_v39, %v898_v38  ;;  %v1147_v8 = vadd.f32 %v1146_v40, %v1143_v45  ;;  %v871_v27 = vpop.permute.xlu1 %870 }
 0x1a1   : > { %v863_v9 = vpop.permute.xlu0 %862  ;;  %v1097_v17 = vmul.f32 %v1096_v29, %v708_v41  ;;  %v1101_v10 = vmul.f32 %v1100_v30, %v791_v60  ;;  %v1048_v12 = vmul.f32 %v1047_v31, %v708_v41  ;;  %v1052_v14 = vmul.f32 %v1051_v33, %v791_v60 }
 0x1a2   : > { %v865_v15 = vadd.f32 %v863_v9, %v2625_v56  ;;  %v1004_v23 = vadd.f32 %v1003_v47, %v1000_v5  ;;  %v955_v19 = vadd.f32 %v954_v4, %v951_v6  ;;  %v906_v25 = vadd.f32 %v905_v35, %v902_v7 }
 0x1a3   : > { %v1151_v28 = vadd.f32 %v1150_v3, %v1147_v8  ;;  %v1098_v42 = vadd.f32 %v1097_v17, %v1094_v61  ;;  %v1049_v38 = vadd.f32 %v1048_v12, %v1045_v57  ;;  %v1244_v43 = vmul.f32 %v1243_v34, %v708_v41 }
 0x1a4   : > { %v873_v46 = vadd.f32 %v871_v27, %v865_v15  ;;  %v1248_v29 = vmul.f32 %v1247_v36, %v791_v60  ;;  %v1192_v30 = vadd.f32 %v1191_v22, %v1172_v16  ;;  %v1195_v31 = vmul.f32 %v1194_v37, %v708_v41 }
 0x1a5   : > { %v1102_v33 = vadd.f32 %v1101_v10, %v1098_v42  ;;  %v1053_v56 = vadd.f32 %v1052_v14, %v1049_v38  ;;  %v1245_v48 = vadd.f32 %v1244_v43, %v1241_v62  ;;  %v1199_v44 = vmul.f32 %v2823_v50, %v791_v60 }
 0x1a6   : > { %v874_v51 = vmax.f32 %v873_v46, 0.0  ;;  %v1196_v63 = vadd.f32 %v1195_v31, %v1192_v30  ;;  %v1202_v0 = vstv %s2689_s29  ;;  %v2824_v45 = vstv %s2592_s13 }
 0x1a7   : > { %v1249_v11 = vadd.f32 %v1248_v29, %v1245_v48  ;;  %v911_v8 = vmax.f32 %v2415_v20, 0.0  ;;  %v1058_v10 = vmax.f32 %v2423_v26, 0.0  ;;  %v1205_v15 = vmax.f32 %v2448_v21, 0.0 }
 0x1a8   : > { %v1007_v61 = vmul.f32 %v2824_v45, %v874_v51  ;;  %v958_v57 = vmul.f32 %v957_v54, %v874_v51  ;;  %v909_v34 = vmul.f32 %v908_v55, %v874_v51  ;;  %v1154_v1 = vmul.f32 %v1153_v58, %v874_v51 }
 0x1a9   : > { %v1105_v36 = vmul.f32 %v1104_v18, %v874_v51  ;;  %v1056_v2 = vmul.f32 %v1055_v52, %v874_v51  ;;  %v1252_v16 = vmul.f32 %v1251_v53, %v874_v51  ;;  %v1200_v22 = vadd.f32 %v1199_v44, %v1196_v63 }
 0x1aa   : > { %v1008_v37 = vadd.f32 %v1007_v61, %v1004_v23  ;;  %v959_v41 = vadd.f32 %v958_v57, %v955_v19  ;;  %v910_v62 = vadd.f32 %v909_v34, %v906_v25  ;;  %v1155_v39 = vadd.f32 %v1154_v1, %v1151_v28 }
 0x1ab   : > { %v1106_v60 = vadd.f32 %v1105_v36, %v1102_v33  ;;  %v1057_v40 = vadd.f32 %v1056_v2, %v1053_v56  ;;  %v1253_v47 = vadd.f32 %v1252_v16, %v1249_v11  ;;  %v1203_v4 = vmul.f32 %v1202_v0, %v874_v51 }
 0x1ac   : > { %v1010_v35 = vmax.f32 %v1008_v37, 0.0  ;;  %v961_v3 = vmax.f32 %v959_v41, 0.0  ;;  %v912_v5 = vmax.f32 %v910_v62, 0.0  ;;  %v1157_v54 = vmax.f32 %v1155_v39, 0.0 }
 0x1ad   : > { %v1204_v6 = vadd.f32 %v1203_v4, %v1200_v22  ;;  %v1108_v55 = vmax.f32 %v1106_v60, 0.0  ;;  %v1059_v58 = vmax.f32 %v1057_v40, 0.0  ;;  %v1255_v18 = vmax.f32 %v1253_v47, 0.0 }
 0x1ae   : > { %1012 = vrot.lane.b32.xlu1 %v1010_v35, %s2016_s9  ;;  %963 = vrot.lane.b32.xlu0 %v961_v3, %s2016_s9  ;;  %v1009_v25 = vmax.f32 %v2465_v49, 0.0  ;;  %v960_v27 = vmax.f32 %v2478_v59, 0.0  ;;  %v1156_v26 = vmax.f32 %v2495_v13, 0.0  ;;  %v1107_v43 = vmax.f32 %v2502_v24, 0.0 }
 0x1af   : > { %914 = vrot.lane.b32.xlu2 %v912_v5, %s2016_s9  ;;  %v1206_v7 = vmax.f32 %v1204_v6, 0.0  ;;  %v1254_v49 = vmax.f32 %v2511_v32, 0.0 }
 0x1b6   : > { %1159 = vrot.lane.b32.xlu1 %v1157_v54, %s2016_s9  ;;  %1110 = vrot.lane.b32.xlu0 %v1108_v55, %s2016_s9 }
 0x1b7   : > { %1061 = vrot.lane.b32.xlu2 %v1059_v58, %s2016_s9 }
 0x1be   : > { %1257 = vrot.lane.b32.xlu0 %v1255_v18, %s2016_s9 }
 0x1bf   : > { %1208 = vrot.lane.b32.xlu2 %v1206_v7, %s2016_s9 }
 0x209   : > { %v915_v9 = vpop.permute.xlu2 %914 }
 0x20a   : > { %v917_v17 = vadd.f32 %v915_v9, %v911_v8 }
 0x20c   : > { %919 = vrot.lane.b32.xlu1 %v917_v17, %s2017_s30 }
 0x211   : > { %v1062_v12 = vpop.permute.xlu2 %1061 }
 0x212   : > { %v1064_v14 = vadd.f32 %v1062_v12, %v1058_v10 }
 0x214   : > { %1066 = vrot.lane.b32.xlu1 %v1064_v14, %s2017_s30 }
 0x219   : > { %v1209_v23 = vpop.permute.xlu2 %1208 }
 0x21a   : > { %v1211_v19 = vadd.f32 %v1209_v23, %v1205_v15 }
 0x21c   : > { %1213 = vrot.lane.b32.xlu1 %v1211_v19, %s2017_s30 }
 0x220   : > { %v1013_v28 = vpop.permute.xlu1 %1012  ;;  %v964_v20 = vpop.permute.xlu0 %963 }
 0x221   : > { %v1015_v42 = vadd.f32 %v1013_v28, %v1009_v25  ;;  %v966_v38 = vadd.f32 %v964_v20, %v960_v27 }
 0x223   : > { %1017 = vrot.lane.b32.xlu0 %v1015_v42, %s2017_s30  ;;  %968 = vrot.lane.b32.xlu2 %v966_v38, %s2017_s30 }
 0x228   : > { %v1160_v46 = vpop.permute.xlu1 %1159  ;;  %v1111_v21 = vpop.permute.xlu0 %1110 }
 0x229   : > { %v1162_v29 = vadd.f32 %v1160_v46, %v1156_v26  ;;  %v1113_v30 = vadd.f32 %v1111_v21, %v1107_v43 }
 0x22b   : > { %1164 = vrot.lane.b32.xlu0 %v1162_v29, %s2017_s30  ;;  %1115 = vrot.lane.b32.xlu2 %v1113_v30, %s2017_s30 }
 0x230   : > { %v1258_v59 = vpop.permute.xlu0 %1257 }
 0x231   : > { %v1260_v31 = vadd.f32 %v1258_v59, %v1254_v49 }
 0x233   : > { %1262 = vrot.lane.b32.xlu2 %v1260_v31, %s2017_s30 }
 0x27d   : > { %v969_v33 = vpop.permute.xlu2 %968 }
 0x27e   : > { %v920_v56 = vpop.permute.xlu1 %919  ;;  %1536 = vst.msk [vmem:[%s438_s18 + $0x8] sm:$0xff] %vm922_vm1, %v969_v33 }
 0x27f   : > { %923 = vst.msk [vmem:[%s438_s18] sm:$0xff] %vm922_vm1, %v920_v56 }
 0x285   : > { %v1116_v13 = vpop.permute.xlu2 %1115 }
 0x286   : > { %v1067_v24 = vpop.permute.xlu1 %1066  ;;  %1569 = vst.msk [vmem:[%s438_s18 + $0x20] sm:$0xff] %vm922_vm1, %v1116_v13 }
 0x287   : > { %1558 = vst.msk [vmem:[%s438_s18 + $0x18] sm:$0xff] %vm922_vm1, %v1067_v24 }
 0x28d   : > { %v1263_v32 = vpop.permute.xlu2 %1262 }
 0x28e   : > { %v1214_v48 = vpop.permute.xlu1 %1213  ;;  %1602 = vst.msk [vmem:[%s438_s18 + $0x38] sm:$0xff] %vm922_vm1, %v1263_v32 }
 0x28f   : > { %1591 = vst.msk [vmem:[%s438_s18 + $0x30] sm:$0xff] %vm922_vm1, %v1214_v48 }
 0x295   : > { %v1018_v50 = vpop.permute.xlu0 %1017 }
 0x296   : > { %1547 = vst.msk [vmem:[%s438_s18 + $0x10] sm:$0xff] %vm922_vm1, %v1018_v50 }
 0x29d   : > { %v1165_v44 = vpop.permute.xlu0 %1164 }
 0x29e   : > { %1580 = vst.msk [vmem:[%s438_s18 + $0x28] sm:$0xff] %vm922_vm1, %v1165_v44 }
 0x29f   : > { %1928 = shalt.err (!%p1925_p13)
}
 0x2a0   : > { %s2018_s3 = smov 128   ;;  %s2019_s24 = smov 8  }
 0x2a1   : > { %1640 = dma.vmem_to_hbm [thread:$0]  (%p2182_p5), %s1282_s0, 1024, %s1284_s25, %s1268_s19, %s2018_s3, %s2018_s3, %s2019_s24  }
 0x2a2 PF: > { %s2829_s28 = sld [smem:[#allocation25_spill]]  ;;  %p1669_p0 = pnand %p1449_p4, %p2190_p7 }
 0x2a3   : > { %s2831_s16 = sld [smem:[#allocation30_spill]] }
 0x2a4   : > { %p1670_p2 = pneg %p1669_p0 }
 0x2a8   : > { %s1298_s6 = sand.u32 1, %s2829_s28  }
 0x2a9   : > { %s1299_s8 = scalar_lea.sflag [#allocation4], %s1298_s6 }
 0x2aa   : > { %1978 = dma.done.wait (%p1670_p2), %s1299_s8, 1024  }
 0x2ab   : > { %1980 = vsyncadd (%p1670_p2), %s1299_s8, 4294966272  ;;  %s29_s10 = sadd.s32 1, %s2831_s16   ;;  %s2832_s27 = sld [smem:[#allocation26_spill]] }
 0x2ac   : > { %p26_p6 = scmp.ge.s32.totalorder %s29_s10, 4   ;;  %s2833_s28 = sld [smem:[#allocation27_spill]] }
 0x2ad   : > { %s2834_s29 = sld [smem:[#allocation33_spill]] }
 0x2ae   : > { %s2835_s30 = sld [smem:[#allocation29_spill]]  ;;  %28 = sbr.rel (!%p26_p6) target bundleno = 21 (0x15), region = 136 }
 0x2af   : > { %s2836_s9 = sld [smem:[#allocation31_spill]] }
 0x2b3   :  { %1305 = vsyncpa [#allocation3], 1 }
 0x2b4   :  { %1307 = vsyncpa [#allocation3 + $0x1], 1 }
 0x2b5   :  { %1308 = vsyncpa [#allocation7], 1 }
 0x2b6   :  { %1309 = vsyncpa [#allocation4], 1 }
 0x2b7   :  { %1311 = vsyncpa [#allocation4 + $0x1], 1 }
 0x2b8   :  { %1312 = vsyncpa [#allocation5], 1 }
 0x2b9   :  { %1314 = vsyncpa [#allocation5 + $0x1], 1 }
 0x2ba   :  { %1315 = vsyncpa [#allocation10], 1 }
 0x2bb   :  { %1316 = vsyncpa [#allocation13], 1 }
 0x2bc   :  { %1317 = vsyncpa [#allocation16], 1 }

</bundles_post_ra>
